<compile_context>
chip_gen: v6e
topology: v6e:2x2x1
jax: 0.10.0
libtpu: 0.0.40
codegen_flags: <defaults>
</compile_context>

<pallas_src>
import functools

import jax
import jax.numpy as jnp
from jax import lax
from jax.experimental import pallas as pl
from jax.experimental.pallas import tpu as pltpu

LANE = 128
_LN_EPS = 1e-5  # PyTorch nn.LayerNorm default


def _round_up(n, m):
    return (n + m - 1) // m * m


def _pad2(a, rows, cols):
    pr, pc = rows - a.shape[0], cols - a.shape[1]
    if pr == 0 and pc == 0:
        return a
    return jnp.pad(a, ((0, pr), (0, pc)))


def _mlp_resnet_kernel(num_blocks, hidden_dim, compute_dtype, precision,
                       x_ref, w_in_ref, b_in_ref,
                       w1_ref, b1_ref, w2_ref, b2_ref,
                       w_out_ref, b_out_ref, out_ref):
    """One batch-tile forward pass.  All parameter refs are VMEM-resident."""

    def mm(a, w):
        # bf16 (or f32) MXU operands, f32 accumulation.
        return jnp.dot(a.astype(compute_dtype), w,
                       preferred_element_type=jnp.float32,
                       precision=precision)

    # dense_input
    h = mm(x_ref[...], w_in_ref[...]) + b_in_ref[...]          # (tm, hid_p) f32

    # Lane mask over the real hidden features (padded lanes of h are exactly 0).
    lane = lax.broadcasted_iota(jnp.int32, h.shape, dimension=1)
    lane_mask = lane < hidden_dim
    inv_n = 1.0 / float(hidden_dim)

    def block_body(blk, h):
        # LayerNorm (affine folded into w1/b1 on the host).  Two-pass masked stats:
        # mean sum is exact because padded lanes of h are zero; the centered term is
        # re-masked so the variance sum is exact and numerically stable.
        mean = jnp.sum(h, axis=-1, keepdims=True) * inv_n
        centered = jnp.where(lane_mask, h - mean, 0.0)
        var = jnp.sum(centered * centered, axis=-1, keepdims=True) * inv_n
        y = (h - mean) * lax.rsqrt(var + _LN_EPS)
        # y's padded lanes are nonzero (-mean/std) but hit zero rows of w1 -> exact.
        y = mm(y, w1_ref[blk]) + b1_ref[pl.ds(blk, 1), :]
        y = jnp.maximum(y, 0.0)                                  # act
        y = mm(y, w2_ref[blk]) + b2_ref[pl.ds(blk, 1), :]
        return h + y          # in_dim == out_dim == hidden_dim (asserted in wrapper)

    h = lax.fori_loop(0, num_blocks, block_body, h)

    # final activation + dense_output
    h = jnp.maximum(h, 0.0)
    out = mm(h, w_out_ref[...]) + b_out_ref[...]
    out_ref[...] = out.astype(out_ref.dtype)


def mlp_resnet_forward(x, params, *, block_m=512, compute_dtype=jnp.bfloat16):
    """params: dict with keys w_in, b_in, blocks (list of (g, beta, w1, b1, w2, b2)),
    w_out, b_out.  Weights are (in_features, out_features); vectors are (1, dim)."""
    batch, in_dim = x.shape
    hidden_dim = params["w_in"].shape[1]
    out_dim = params["w_out"].shape[1]
    num_blocks = len(params["blocks"])
    assert num_blocks >= 1, "MLPResNet needs at least one residual block"
    hidden4 = params["blocks"][0][2].shape[1]

    # Shape guards: residual add needs in==out==hidden; all blocks share hidden4.
    for (_, _, w1, _, w2, _) in params["blocks"]:
        assert w1.shape == (hidden_dim, hidden4) and w2.shape == (hidden4, hidden_dim), \
            "MLPResNet blocks must all be (hidden_dim -> 4*hidden_dim -> hidden_dim)"

    # Lane padding (last dim -> multiples of 128).
    in_p = _round_up(in_dim, LANE)
    hid_p = _round_up(hidden_dim, LANE)
    hid4_p = _round_up(hidden4, LANE)
    out_p = _round_up(out_dim, LANE)

    # Batch tiling: prefer an even (>=2) grid-step count so v7x's two TCs balance.
    tm = min(block_m, _round_up(batch, 8))
    n_steps = -(-batch // tm)
    if n_steps > 1 and n_steps % 2 == 1:
        n_steps += 1
    b_pad = n_steps * tm
    grid = (n_steps,)

    wt = compute_dtype  # storage dtype for weights + activation input tile

    # Fold LayerNorm affine into dense1:  (x_n*g + b) @ w1 == x_n @ (g*w1) + (b1 + b@w1)
    w1_list, b1_list, w2_list, b2_list = [], [], [], []
    for (g, be, w1, b1, w2, b2) in params["blocks"]:
        w1_f = w1 * g.reshape(-1, 1)
        b1_f = b1 + be @ w1
        w1_list.append(_pad2(w1_f, hid_p, hid4_p).astype(wt))
        b1_list.append(_pad2(b1_f, 1, hid4_p))
        w2_list.append(_pad2(w2, hid4_p, hid_p).astype(wt))
        b2_list.append(_pad2(b2, 1, hid_p))

    w1_stack = jnp.stack(w1_list)              # (nb, hid_p, hid4_p)
    b1_stack = jnp.concatenate(b1_list, 0)     # (nb, hid4_p)  f32
    w2_stack = jnp.stack(w2_list)              # (nb, hid4_p, hid_p)
    b2_stack = jnp.concatenate(b2_list, 0)     # (nb, hid_p)   f32

    x_p = _pad2(x, b_pad, in_p).astype(wt)

    flat_inputs = [
        x_p,
        _pad2(params["w_in"], in_p, hid_p).astype(wt),
        _pad2(params["b_in"], 1, hid_p),
        w1_stack, b1_stack, w2_stack, b2_stack,
        _pad2(params["w_out"], hid_p, out_p).astype(wt),
        _pad2(params["b_out"], 1, out_p),
    ]

    # Grid-invariant params: constant index_map + single buffer (no 2x residency).
    def _param_spec(a):
        nd = a.ndim
        return pl.BlockSpec(a.shape, lambda i: (0,) * nd,
                            pipeline_mode=pl.Buffered(1))

    in_specs = [pl.BlockSpec((tm, in_p), lambda i: (i, 0))]
    in_specs += [_param_spec(a) for a in flat_inputs[1:]]
    out_spec = pl.BlockSpec((tm, out_p), lambda i: (i, 0))

    # VMEM budget: single-buffered params + double-buffered activation tiles
    # + f32 intermediates, with headroom; clamped to the chip's capacity.
    param_bytes = sum(int(a.size) * a.dtype.itemsize for a in flat_inputs[1:])
    act_bytes = 2 * tm * (in_p * x_p.dtype.itemsize + out_p * 4)
    interm_bytes = 4 * tm * max(hid_p, hid4_p) * 4
    needed = param_bytes + act_bytes + interm_bytes + (4 << 20)
    try:
        vmem_cap = int(pltpu.get_tpu_info().vmem_capacity_bytes)
    except Exception:
        vmem_cap = 64 << 20
    vmem_limit = int(min(max(needed, 32 << 20), max(vmem_cap - (8 << 20), 32 << 20)))

    flops = 2 * b_pad * (in_p * hid_p
                         + num_blocks * (hid_p * hid4_p + hid4_p * hid_p)
                         + hid_p * out_p)
    bytes_accessed = param_bytes + int(x_p.size) * x_p.dtype.itemsize \
        + b_pad * out_p * 4
    cost = pl.CostEstimate(flops=flops,
                           transcendentals=b_pad * num_blocks,
                           bytes_accessed=bytes_accessed)

    # f32 debug path gets exact (multi-pass) MXU semantics; bf16 is the perf path.
    precision = lax.Precision.HIGHEST if compute_dtype == jnp.float32 else None
    kernel = functools.partial(_mlp_resnet_kernel, num_blocks, hidden_dim,
                               compute_dtype, precision)

    out_padded = pl.pallas_call(
        kernel,
        out_shape=jax.ShapeDtypeStruct((b_pad, out_p), jnp.float32),
        grid=grid,
        in_specs=in_specs,
        out_specs=out_spec,
        compiler_params=pltpu.CompilerParams(
            dimension_semantics=("parallel",),   # v7x: shard batch tiles over 2 TCs
            vmem_limit_bytes=vmem_limit,
        ),
        cost_estimate=cost,
    )(*flat_inputs)

    return out_padded[:batch, :out_dim]


def init_params(key, in_dim, hidden_dim, out_dim, num_blocks):
    """nn.Linear default init (U(-1/sqrt(fan_in), .)).  LayerNorm affine is drawn
    randomly (instead of gamma=1/beta=0) so the affine-fold path is exercised."""
    def linear(k, fan_in, fan_out):
        kw, kb = jax.random.split(k)
        bound = 1.0 / jnp.sqrt(fan_in)
        w = jax.random.uniform(kw, (fan_in, fan_out), jnp.float32, -bound, bound)
        b = jax.random.uniform(kb, (1, fan_out), jnp.float32, -bound, bound)
        return w, b

    keys = jax.random.split(key, 2 + num_blocks * 3)
    w_in, b_in = linear(keys[0], in_dim, hidden_dim)
    blocks = []
    for i in range(num_blocks):
        kg, k1, k2 = keys[1 + 3 * i], keys[2 + 3 * i], keys[3 + 3 * i]
        kg1, kg2 = jax.random.split(kg)
        g = 1.0 + 0.1 * jax.random.normal(kg1, (1, hidden_dim), jnp.float32)
        be = 0.1 * jax.random.normal(kg2, (1, hidden_dim), jnp.float32)
        w1, b1 = linear(k1, hidden_dim, hidden_dim * 4)
        w2, b2 = linear(k2, hidden_dim * 4, hidden_dim)
        blocks.append((g, be, w1, b1, w2, b2))
    w_out, b_out = linear(keys[-1], hidden_dim, out_dim)
    return {"w_in": w_in, "b_in": b_in, "blocks": blocks,
            "w_out": w_out, "b_out": b_out}


def mlp_resnet_reference(x, params):
    """Pure-JAX f32 reference of the PyTorch forward pass (dropout=None, LN=True)."""
    def layer_norm(v, g, be):
        mean = jnp.mean(v, axis=-1, keepdims=True)
        var = jnp.mean((v - mean) ** 2, axis=-1, keepdims=True)
        return (v - mean) * lax.rsqrt(var + _LN_EPS) * g + be

    h = x @ params["w_in"] + params["b_in"]
    for (g, be, w1, b1, w2, b2) in params["blocks"]:
        residual = h
        y = layer_norm(h, g, be)
        y = jnp.maximum(y @ w1 + b1, 0.0)
        y = y @ w2 + b2
        h = residual + y
    h = jnp.maximum(h, 0.0)
    return h @ params["w_out"] + params["b_out"]


if __name__ == "__main__":
    # Small-but-tileable shapes: batch=256 (2 grid steps of 128 rows -> even for v7x),
    # in_dim=32, hidden_dim=64 (block hidden=256), out_dim=8, 2 blocks.
    batch, in_dim, hidden_dim, out_dim, num_blocks = 256, 32, 64, 8, 2

    key = jax.random.PRNGKey(0)
    k_x, k_p = jax.random.split(key)
    x = jax.random.normal(k_x, (batch, in_dim), jnp.float32)
    params = init_params(k_p, in_dim, hidden_dim, out_dim, num_blocks)

    ref = mlp_resnet_reference(x, params)

    # Default bf16-operand path (perf config): f32 accumulation, loose tolerance.
    out_bf16 = jax.block_until_ready(mlp_resnet_forward(x, params, block_m=128))
    assert out_bf16.shape == (batch, out_dim)
    rel_err = jnp.linalg.norm(out_bf16 - ref) / jnp.linalg.norm(ref)
    assert rel_err < 3e-2, f"bf16 relative error too large: {rel_err}"

    # f32 debug path: exact module semantics, tight tolerance.
    out_f32 = jax.block_until_ready(
        mlp_resnet_forward(x, params, block_m=128, compute_dtype=jnp.float32))
    assert jnp.allclose(out_f32, ref, rtol=1e-4, atol=1e-4), "f32 mismatch vs reference"

    print("KERNEL_OK")
</pallas_src>

<mosaic_0001>
module attributes {stable_mosaic.version = 11 : i64} {
  func.func @_mlp_resnet_kernel(%arg0: i32, %arg1: memref<128x128xbf16, #tpu.memory_space<vmem>>, %arg2: memref<128x128xbf16, #tpu.memory_space<vmem>>, %arg3: memref<1x128xf32, #tpu.memory_space<vmem>>, %arg4: memref<2x128x256xbf16, #tpu.memory_space<vmem>>, %arg5: memref<2x256xf32, #tpu.memory_space<vmem>>, %arg6: memref<2x256x128xbf16, #tpu.memory_space<vmem>>, %arg7: memref<2x128xf32, #tpu.memory_space<vmem>>, %arg8: memref<128x128xbf16, #tpu.memory_space<vmem>>, %arg9: memref<1x128xf32, #tpu.memory_space<vmem>>, %arg10: memref<128x128xf32, #tpu.memory_space<vmem>>) attributes {dimension_semantics = [#tpu.dimension_semantics<parallel>], iteration_bounds = array<i64: 2>, scalar_prefetch = 0 : i64, scratch_operands = 0 : i64, tpu.core_type = #tpu.core_type<tc>, window_params = [{transform_indices = @transform_0, window_bounds = array<i64: 128, 128>}, {pipeline_mode = #tpu.pipeline_mode<synchronous>, transform_indices = @transform_1, window_bounds = array<i64: 128, 128>}, {pipeline_mode = #tpu.pipeline_mode<synchronous>, transform_indices = @transform_2, window_bounds = array<i64: 1, 128>}, {pipeline_mode = #tpu.pipeline_mode<synchronous>, transform_indices = @transform_3, window_bounds = array<i64: 2, 128, 256>}, {pipeline_mode = #tpu.pipeline_mode<synchronous>, transform_indices = @transform_4, window_bounds = array<i64: 2, 256>}, {pipeline_mode = #tpu.pipeline_mode<synchronous>, transform_indices = @transform_5, window_bounds = array<i64: 2, 256, 128>}, {pipeline_mode = #tpu.pipeline_mode<synchronous>, transform_indices = @transform_6, window_bounds = array<i64: 2, 128>}, {pipeline_mode = #tpu.pipeline_mode<synchronous>, transform_indices = @transform_7, window_bounds = array<i64: 128, 128>}, {pipeline_mode = #tpu.pipeline_mode<synchronous>, transform_indices = @transform_8, window_bounds = array<i64: 1, 128>}, {transform_indices = @transform_9, window_bounds = array<i64: 128, 128>}]} {
    %c0 = arith.constant 0 : index
    %c0_0 = arith.constant 0 : index
    %0 = vector.load %arg1[%c0, %c0_0] : memref<128x128xbf16, #tpu.memory_space<vmem>>, vector<128x128xbf16>
    %c0_1 = arith.constant 0 : index
    %c0_2 = arith.constant 0 : index
    %1 = vector.load %arg2[%c0_1, %c0_2] : memref<128x128xbf16, #tpu.memory_space<vmem>>, vector<128x128xbf16>
    %cst = arith.constant dense<0.000000e+00> : vector<128x128xf32>
    %2 = tpu.matmul %0, %1, %cst {dimension_numbers = #tpu.dot_dimension_numbers<[1], [0], [0], [1], [0, 0, 1, 1], [], []>} : vector<128x128xbf16>, vector<128x128xbf16>, vector<128x128xf32> -> vector<128x128xf32>
    %c0_3 = arith.constant 0 : index
    %c0_4 = arith.constant 0 : index
    %3 = vector.load %arg3[%c0_3, %c0_4] : memref<1x128xf32, #tpu.memory_space<vmem>>, vector<1x128xf32>
    %4 = vector.broadcast %3 : vector<1x128xf32> to vector<128x128xf32>
    %5 = arith.addf %2, %4 : vector<128x128xf32>
    %6 = tpu.iota {dimensions = array<i32: 1>} : vector<128x128xi32>
    %c64_i32 = arith.constant 64 : i32
    %7 = vector.broadcast %c64_i32 : i32 to vector<128x128xi32>
    %8 = arith.cmpi slt, %6, %7 : vector<128x128xi32>
    %c0_i32 = arith.constant 0 : i32
    %c2_i32 = arith.constant 2 : i32
    %9 = arith.addi %c0_i32, %c2_i32 : i32
    %c1_i32 = arith.constant 1 : i32
    %10 = scf.for %arg11 = %c0_i32 to %9 step %c1_i32 iter_args(%arg12 = %5) -> (vector<128x128xf32>)  : i32 {
      %cst_14 = arith.constant dense<0.000000e+00> : vector<128xf32>
      %20 = vector.multi_reduction <add>, %arg12, %cst_14 [1] : vector<128x128xf32> to vector<128xf32>
      %21 = vector.shape_cast %20 : vector<128xf32> to vector<128x1xf32>
      %cst_15 = arith.constant 1.562500e-02 : f32
      %22 = vector.broadcast %cst_15 : f32 to vector<128x1xf32>
      %23 = arith.mulf %21, %22 : vector<128x1xf32>
      %24 = vector.broadcast %23 : vector<128x1xf32> to vector<128x128xf32>
      %25 = arith.subf %arg12, %24 : vector<128x128xf32>
      %cst_16 = arith.constant 0.000000e+00 : f32
      %26 = vector.broadcast %cst_16 : f32 to vector<128x128xf32>
      %27 = arith.select %8, %25, %26 : vector<128x128xi1>, vector<128x128xf32>
      %28 = arith.mulf %27, %27 : vector<128x128xf32>
      %cst_17 = arith.constant dense<0.000000e+00> : vector<128xf32>
      %29 = vector.multi_reduction <add>, %28, %cst_17 [1] : vector<128x128xf32> to vector<128xf32>
      %30 = vector.shape_cast %29 : vector<128xf32> to vector<128x1xf32>
      %cst_18 = arith.constant 1.562500e-02 : f32
      %31 = vector.broadcast %cst_18 : f32 to vector<128x1xf32>
      %32 = arith.mulf %30, %31 : vector<128x1xf32>
      %33 = vector.broadcast %23 : vector<128x1xf32> to vector<128x128xf32>
      %34 = arith.subf %arg12, %33 : vector<128x128xf32>
      %cst_19 = arith.constant 9.99999974E-6 : f32
      %35 = vector.broadcast %cst_19 : f32 to vector<128x1xf32>
      %36 = arith.addf %32, %35 : vector<128x1xf32>
      %37 = math.rsqrt %36 : vector<128x1xf32>
      %38 = vector.broadcast %37 : vector<128x1xf32> to vector<128x128xf32>
      %39 = arith.mulf %34, %38 : vector<128x128xf32>
      %40 = arith.index_cast %arg11 : i32 to index
      %c0_20 = arith.constant 0 : index
      %c0_21 = arith.constant 0 : index
      %41 = vector.load %arg4[%40, %c0_20, %c0_21] : memref<2x128x256xbf16, #tpu.memory_space<vmem>>, vector<1x128x256xbf16>
      %42 = vector.shape_cast %41 : vector<1x128x256xbf16> to vector<128x256xbf16>
      %43 = arith.truncf %39 : vector<128x128xf32> to vector<128x128xbf16>
      %cst_22 = arith.constant dense<0.000000e+00> : vector<128x256xf32>
      %44 = tpu.matmul %43, %42, %cst_22 {dimension_numbers = #tpu.dot_dimension_numbers<[1], [0], [0], [1], [0, 0, 1, 1], [], []>} : vector<128x128xbf16>, vector<128x256xbf16>, vector<128x256xf32> -> vector<128x256xf32>
      %45 = arith.index_cast %arg11 : i32 to index
      %c0_23 = arith.constant 0 : index
      %46 = vector.load %arg5[%45, %c0_23] : memref<2x256xf32, #tpu.memory_space<vmem>>, vector<1x256xf32>
      %47 = vector.broadcast %46 : vector<1x256xf32> to vector<128x256xf32>
      %48 = arith.addf %44, %47 : vector<128x256xf32>
      %cst_24 = arith.constant 0.000000e+00 : f32
      %49 = vector.broadcast %cst_24 : f32 to vector<128x256xf32>
      %50 = arith.maximumf %48, %49 : vector<128x256xf32>
      %51 = arith.index_cast %arg11 : i32 to index
      %c0_25 = arith.constant 0 : index
      %c0_26 = arith.constant 0 : index
      %52 = vector.load %arg6[%51, %c0_25, %c0_26] : memref<2x256x128xbf16, #tpu.memory_space<vmem>>, vector<1x256x128xbf16>
      %53 = vector.shape_cast %52 : vector<1x256x128xbf16> to vector<256x128xbf16>
      %54 = arith.truncf %50 : vector<128x256xf32> to vector<128x256xbf16>
      %cst_27 = arith.constant dense<0.000000e+00> : vector<128x128xf32>
      %55 = tpu.matmul %54, %53, %cst_27 {dimension_numbers = #tpu.dot_dimension_numbers<[1], [0], [0], [1], [0, 0, 1, 1], [], []>} : vector<128x256xbf16>, vector<256x128xbf16>, vector<128x128xf32> -> vector<128x128xf32>
      %56 = arith.index_cast %arg11 : i32 to index
      %c0_28 = arith.constant 0 : index
      %57 = vector.load %arg7[%56, %c0_28] : memref<2x128xf32, #tpu.memory_space<vmem>>, vector<1x128xf32>
      %58 = vector.broadcast %57 : vector<1x128xf32> to vector<128x128xf32>
      %59 = arith.addf %55, %58 : vector<128x128xf32>
      %60 = arith.addf %arg12, %59 : vector<128x128xf32>
      scf.yield %60 : vector<128x128xf32>
    }
    %c2_i32_5 = arith.constant 2 : i32
    %cst_6 = arith.constant 0.000000e+00 : f32
    %11 = vector.broadcast %cst_6 : f32 to vector<128x128xf32>
    %12 = arith.maximumf %10, %11 : vector<128x128xf32>
    %c0_7 = arith.constant 0 : index
    %c0_8 = arith.constant 0 : index
    %13 = vector.load %arg8[%c0_7, %c0_8] : memref<128x128xbf16, #tpu.memory_space<vmem>>, vector<128x128xbf16>
    %14 = arith.truncf %12 : vector<128x128xf32> to vector<128x128xbf16>
    %cst_9 = arith.constant dense<0.000000e+00> : vector<128x128xf32>
    %15 = tpu.matmul %14, %13, %cst_9 {dimension_numbers = #tpu.dot_dimension_numbers<[1], [0], [0], [1], [0, 0, 1, 1], [], []>} : vector<128x128xbf16>, vector<128x128xbf16>, vector<128x128xf32> -> vector<128x128xf32>
    %c0_10 = arith.constant 0 : index
    %c0_11 = arith.constant 0 : index
    %16 = vector.load %arg9[%c0_10, %c0_11] : memref<1x128xf32, #tpu.memory_space<vmem>>, vector<1x128xf32>
    %17 = vector.broadcast %16 : vector<1x128xf32> to vector<128x128xf32>
    %18 = arith.addf %15, %17 : vector<128x128xf32>
    %c0_12 = arith.constant 0 : index
    %c0_13 = arith.constant 0 : index
    %19 = vector.load %arg10[%c0_12, %c0_13] : memref<128x128xf32, #tpu.memory_space<vmem>>, vector<128x128xf32>
    tpu.vector_store %arg10[%c0_12, %c0_13], %18 {strides = array<i32>} : memref<128x128xf32, #tpu.memory_space<vmem>>, vector<128x128xf32>,
    return
  }
  func.func @transform_0(%arg0: i32) -> (i32, i32) {
    %c0_i32 = arith.constant 0 : i32
    %c0_i32_0 = arith.constant 0 : i32
    return %arg0, %c0_i32 : i32, i32
  }
  func.func @transform_1(%arg0: i32) -> (i32, i32) {
    %c0_i32 = arith.constant 0 : i32
    %c0_i32_0 = arith.constant 0 : i32
    %c0_i32_1 = arith.constant 0 : i32
    return %c0_i32, %c0_i32_0 : i32, i32
  }
  func.func @transform_2(%arg0: i32) -> (i32, i32) {
    %c0_i32 = arith.constant 0 : i32
    %c0_i32_0 = arith.constant 0 : i32
    %c0_i32_1 = arith.constant 0 : i32
    return %c0_i32, %c0_i32_0 : i32, i32
  }
  func.func @transform_3(%arg0: i32) -> (i32, i32, i32) {
    %c0_i32 = arith.constant 0 : i32
    %c0_i32_0 = arith.constant 0 : i32
    %c0_i32_1 = arith.constant 0 : i32
    %c0_i32_2 = arith.constant 0 : i32
    return %c0_i32, %c0_i32_0, %c0_i32_1 : i32, i32, i32
  }
  func.func @transform_4(%arg0: i32) -> (i32, i32) {
    %c0_i32 = arith.constant 0 : i32
    %c0_i32_0 = arith.constant 0 : i32
    %c0_i32_1 = arith.constant 0 : i32
    return %c0_i32, %c0_i32_0 : i32, i32
  }
  func.func @transform_5(%arg0: i32) -> (i32, i32, i32) {
    %c0_i32 = arith.constant 0 : i32
    %c0_i32_0 = arith.constant 0 : i32
    %c0_i32_1 = arith.constant 0 : i32
    %c0_i32_2 = arith.constant 0 : i32
    return %c0_i32, %c0_i32_0, %c0_i32_1 : i32, i32, i32
  }
  func.func @transform_6(%arg0: i32) -> (i32, i32) {
    %c0_i32 = arith.constant 0 : i32
    %c0_i32_0 = arith.constant 0 : i32
    %c0_i32_1 = arith.constant 0 : i32
    return %c0_i32, %c0_i32_0 : i32, i32
  }
  func.func @transform_7(%arg0: i32) -> (i32, i32) {
    %c0_i32 = arith.constant 0 : i32
    %c0_i32_0 = arith.constant 0 : i32
    %c0_i32_1 = arith.constant 0 : i32
    return %c0_i32, %c0_i32_0 : i32, i32
  }
  func.func @transform_8(%arg0: i32) -> (i32, i32) {
    %c0_i32 = arith.constant 0 : i32
    %c0_i32_0 = arith.constant 0 : i32
    %c0_i32_1 = arith.constant 0 : i32
    return %c0_i32, %c0_i32_0 : i32, i32
  }
  func.func @transform_9(%arg0: i32) -> (i32, i32) {
    %c0_i32 = arith.constant 0 : i32
    %c0_i32_0 = arith.constant 0 : i32
    return %arg0, %c0_i32 : i32, i32
  }
}

</mosaic_0001>

<bundles_post_ra>
// kernel: tpu_custom_call.1
= control target key start
LH: loop header
LB: loop body
LE: loop exit
PB: predicated region body
PF: predicated region fallthrough
CT: control target
= control target key end

     0   :  { %s3511_s0 = inlined_call_operand.hbm [shape: bf16[256,128], index: 0, kind: input, shape index: {}]   ;;  %s3512_s1 = inlined_call_operand.hbm [shape: bf16[128,128], index: 1, kind: input, shape index: {}]   ;;  %s3513_s2 = inlined_call_operand.vmem [shape: f32[1,128], index: 2, kind: input, shape index: {}]   ;;  %s3514_s3 = inlined_call_operand.hbm [shape: bf16[2,128,256], index: 3, kind: input, shape index: {}]   ;;  %s3515_s4 = inlined_call_operand.vmem [shape: f32[2,256], index: 4, kind: input, shape index: {}]   ;;  %s3516_s5 = inlined_call_operand.hbm [shape: bf16[2,256,128], index: 5, kind: input, shape index: {}]   ;;  %s3517_s6 = inlined_call_operand.vmem [shape: f32[2,128], index: 6, kind: input, shape index: {}]   ;;  %s3518_s7 = inlined_call_operand.hbm [shape: bf16[128,128], index: 7, kind: input, shape index: {}]   ;;  %s3519_s8 = inlined_call_operand.vmem [shape: f32[1,128], index: 8, kind: input, shape index: {}]   ;;  %s3520_s9 = inlined_call_operand.hbm [shape: f32[256,128], index: 9, kind: output, shape index: {}]  }
   0x1   :  { %3527 = sst [smem:[#allocation16_spill]] %s3512_s1 }
   0x2   :  { %3528 = sst [smem:[#allocation17_spill]] %s3514_s3 }
   0x3   :  { %3529 = sst [smem:[#allocation18_spill]] %s3516_s5 }
   0x4   :  { %14 = vsyncpa [#allocation3], 0 }
   0x5   :  { %16 = vsyncpa [#allocation3 + $0x1], 0 }
   0x6   :  { %17 = vsyncpa [#allocation6], 0 }
   0x7   :  { %18 = vsyncpa [#allocation9], 0 }
   0x8   :  { %19 = vsyncpa [#allocation4], 0 }
   0x9   :  { %21 = vsyncpa [#allocation4 + $0x1], 0  ;;  %s2806_s30 = smov 0   ;;  %s2808_s10 = smov 0  }
   0xa   :  { %s2810_s11 = smov 0   ;;  %s2812_s12 = smov 0  }
   0xb LB: > { %s2827_s13 = sadd.s32 4294967295, %s2673_s12   ;;  %s1792_s14 = sadd.s32 4294967294, %s2673_s12   ;;  %s2673_s12 = sphi %s2812_s12, %s3586_s12   ;;  %s2669_s11 = sphi %s2810_s11, %s3585_s11   ;;  %s2665_s10 = sphi %s2808_s10, %s3584_s10   ;;  %s2661_s30 = sphi %s2806_s30, %s3583_s30  }
   0xc   : > { %p47_p0 = scmp.ne.s32.totalorder %s2665_s10, %s2661_s30  ;;  %p3521_p1 = scmp.eq.s32.totalorder %s2827_s13, 0 }
   0xd   : > { %p239_p2 = scmp.eq.s32.totalorder %s2827_s13, 1  ;;  %p245_p3 = scmp.eq.s32.totalorder %s1792_s14, 1 }
   0xe   : > { %p2836_p4 = por %p3521_p1, %p47_p0  ;;  %p1793_p5 = scmp.ge.s32.totalorder %s2673_s12, 1 }
   0xf   : > { %p2841_p6 = por %p245_p3, %p47_p0  ;;  %p252_p7 = scmp.lt.s32.totalorder %s2673_s12, 3 }
  0x10   : > { %s3530_s15 = scalar_select %p2836_p4, 1, 0 }
  0x11   : > { %s3531_s16 = scalar_select %p2841_p6, 1, 0 }
  0x12   : > { %p2846_p8 = pnand %p1793_p5, %p252_p7  ;;  %s2743_s18 = smov [#allocation5]  }
  0x13   : > { %s264_s19 = sshll.u32 %s2743_s18, 4  ;;  %s2744_s21 = smov [#allocation8]   ;;  %s265_s19 = int_to_ptr.vmem [resolvable:$true] %s264_s19 }
  0x14   : > { %s3532_s17 = scalar_select %p2846_p8, 1, 0 }
  0x15   : > { %p2095_p9 = pneg %p2846_p8  ;;  %s296_s22 = sshll.u32 %s2744_s21, 4  ;;  %s297_s22 = int_to_ptr.vmem [resolvable:$true] %s296_s22 }
  0x16   : > { %s2745_s23 = smov [#allocation7]   ;;  %s2412_s25 = scalar_lea.vmem %s265_s19, 1024 }
  0x17   : > { %p2855_p11 = pnand %p2095_p9, %p3521_p1  ;;  %s280_s24 = sshll.u32 %s2745_s23, 4  ;;  %s281_s24 = int_to_ptr.vmem [resolvable:$true] %s280_s24 }
  0x18   : > { %p2413_p13 = scmp.ne.s32.totalorder %s265_s19, %s2412_s25  ;;  %p2420_p5 = scmp.lt.s32.totalorder %s265_s19, %s265_s19 }
  0x19   : > { %p2403_p12 = pneg %p2855_p11  ;;  %p2421_p7 = scmp.lt.s32.totalorder %s2412_s25, %s2412_s25 }
  0x1b   : > { %p2415_p0 = pnand %p2413_p13, %p2403_p12  ;;  %p2422_p9 = por %p2421_p7, %p2420_p5 }
  0x1d   : > { %p2416_p3 = pneg %p2415_p0 }
  0x1f   : > { %p2423_p10 = pnand %p2422_p9, %p2416_p3 }
  0x21   : > { %2426 = shalt.err (!%p2423_p10)
}
  0x22   : > { %s3522_s26 = smov 64   ;;  %s3523_s27 = smov 4  }
  0x23   : > { %s3534_s1 = sld [smem:[#allocation16_spill]]  ;;  %s2438_s14 = scalar_lea.vmem %s297_s22, 4096 }
  0x24   : > { %p2439_p13 = scmp.ne.s32.totalorder %s297_s22, %s2438_s14  ;;  %p2446_p3 = scmp.lt.s32.totalorder %s297_s22, %s297_s22 }
  0x25   : > { %p2447_p10 = scmp.lt.s32.totalorder %s2438_s14, %s2438_s14 }
  0x26   : > { %p2441_p0 = pnand %p2439_p13, %p2403_p12 }
  0x27   : > { %p2448_p7 = por %p2447_p10, %p2446_p3 }
  0x28   : > { %p2442_p5 = pneg %p2441_p0 }
  0x29   : > { %2098 = dma.hbm_to_vmem [thread:$0]  (!%p2855_p11), %s3534_s1, 1024, %s265_s19, [#allocation6], %s3522_s26, %s3522_s26, %s3523_s27  }
  0x2a   : > { %p2449_p9 = pnand %p2448_p7, %p2442_p5 }
  0x2c   : > { %2452 = shalt.err (!%p2449_p9)
}
  0x2d   : > { %s3535_s5 = sld [smem:[#allocation18_spill]]  ;;  %s2464_s19 = scalar_lea.vmem %s281_s24, 4096 }
  0x2e   : > { %p2465_p1 = scmp.ne.s32.totalorder %s281_s24, %s2464_s19  ;;  %p2472_p3 = scmp.lt.s32.totalorder %s281_s24, %s281_s24 }
  0x2f   : > { %p2473_p5 = scmp.lt.s32.totalorder %s2464_s19, %s2464_s19 }
  0x30   : > { %p2467_p13 = pnand %p2465_p1, %p2403_p12 }
  0x31   : > { %p2474_p10 = por %p2473_p5, %p2472_p3 }
  0x32   : > { %p2468_p0 = pneg %p2467_p13 }
  0x33   : > { %2104 = dma.hbm_to_vmem [thread:$0]  (!%p2855_p11), %s3535_s5, 4096, %s297_s22, [#allocation9], %s3522_s26, %s3522_s26, %s3523_s27  }
  0x34   : > { %p2475_p7 = pnand %p2474_p10, %p2468_p0 }
  0x36   : > { %2478 = shalt.err (!%p2475_p7)
}
  0x37   : > { %s2748_s23 = smov 128   ;;  %s2749_s25 = smov 8  }
  0x38   : > { %s3536_s3 = sld [smem:[#allocation17_spill]]  ;;  %s2750_s22 = smov [#allocation10]  }
  0x39   : > { %s312_s14 = sshll.u32 %s2750_s22, 4  ;;  %s313_s14 = int_to_ptr.vmem [resolvable:$true] %s312_s14 }
  0x3a   : > { %s2490_s18 = scalar_lea.vmem %s313_s14, 1024  ;;  %p2498_p0 = scmp.lt.s32.totalorder %s313_s14, %s313_s14 }
  0x3b   : > { %p2491_p1 = scmp.ne.s32.totalorder %s313_s14, %s2490_s18  ;;  %p2499_p3 = scmp.lt.s32.totalorder %s2490_s18, %s2490_s18 }
  0x3d   : > { %p2493_p9 = pnand %p2491_p1, %p2403_p12  ;;  %p2500_p5 = por %p2499_p3, %p2498_p0 }
  0x3e   : > { %2101 = dma.hbm_to_vmem [thread:$0]  (!%p2855_p11), %s3536_s3, 4096, %s281_s24, [#allocation6], %s2748_s23, %s2748_s23, %s2749_s25  }
  0x3f   : > { %p2494_p13 = pneg %p2493_p9 }
  0x41   : > { %p2501_p10 = pnand %p2500_p5, %p2494_p13 }
  0x43   : > { %2504 = shalt.err (!%p2501_p10)
}
  0x44   : > { %2107 = dma.hbm_to_vmem [thread:$0]  (!%p2855_p11), %s3518_s7, 1024, %s313_s14, [#allocation9], %s3522_s26, %s3522_s26, %s3523_s27  }
  0x45   : > { %s2903_s19 = sadd.s32 1, %s2673_s12   ;;  %s34_s20 = sadd.s32 1, %s2669_s11 }
  0x46   : > { %s31_s23 = ssub.s32 %s2673_s12, %s2903_s19  ;;  %p41_p12 = scmp.ne.s32.totalorder %s2669_s11, %s2665_s10 }
  0x47   : > { %p32_p7 = scmp.eq.s32.totalorder %s31_s23, 0  ;;  %p42_p1 = scmp.eq.s32.totalorder %s2673_s12, 0 }
  0x48   : > { %p2913_p9 = por %p239_p2, %p41_p12  ;;  %p2120_p13 = scmp.lt.s32.totalorder %s2673_s12, 2 }
  0x49   : > { %s2919_s28 = scalar_select %p32_p7, %s2669_s11, %s34_s20  }
  0x4a   : > { %s3537_s25 = scalar_select %p2913_p9, 1, 0 }
  0x4b   : > { %p43_p0 = por %p42_p1, %p41_p12  ;;  %s329_s29 = sand.u32 1, %s2669_s11  }
  0x4c   : > { %s1799_s22 = sshll.u32 %s329_s29, 6  ;;  %s1878_s14 = sshll.u32 %s2673_s12, 10 }
  0x4d   : > { %s2926_s21 = scalar_lea.hbm %s3511_s0, %s1878_s14  ;;  %s333_s23 = scalar_lea.vmem [#allocation2], %s1799_s22 }
  0x4e   : > { %s340_s26 = sshll.u32 %s333_s23, 4  ;;  %p2930_p2 = pnand %p2120_p13, %p43_p0  ;;  %s2928_s26 = int_to_ptr.vmem [resolvable:$true] %s340_s26 }
  0x4f   : > { %s2934_s20 = scalar_lea.sflag [#allocation3], %s329_s29  ;;  %s2505_s1 = scalar_lea.hbm %s2926_s21, 1024 }
  0x50   : > { %p2506_p11 = scmp.ne.s32.totalorder %s2926_s21, %s2505_s1  ;;  %p2507_p3 = pneg %p2930_p2 }
  0x51   : > { %s2510_s22 = scalar_lea.hbm %s3511_s0, 2048  ;;  %p2511_p12 = scmp.lt.s32.totalorder %s2926_s21, %s3511_s0 }
  0x52   : > { %p2508_p5 = pnand %p2507_p3, %p2506_p11  ;;  %p2512_p7 = scmp.lt.s32.totalorder %s2510_s22, %s2505_s1 }
  0x54   : > { %p2509_p10 = pneg %p2508_p5  ;;  %p2513_p1 = por %p2512_p7, %p2511_p12 }
  0x56   : > { %p2514_p13 = pnand %p2513_p1, %p2509_p10 }
  0x58   : > { %2517 = shalt.err (!%p2514_p13)
}
  0x59   : > { %s2518_s29 = scalar_lea.vmem %s2928_s26, 1024  ;;  %s2751_s3 = smov [#allocation2]  }
  0x5a   : > { %p2519_p0 = scmp.ne.s32.totalorder %s2928_s26, %s2518_s29  ;;  %s2523_s5 = sshll.u32 %s2751_s3, 4  ;;  %s2524_s5 = int_to_ptr.vmem [resolvable:$false] %s2523_s5 }
  0x5b   : > { %s2525_s14 = scalar_lea.vmem %s2524_s5, 2048  ;;  %p2526_p5 = scmp.lt.s32.totalorder %s2928_s26, %s2524_s5 }
  0x5c   : > { %p2521_p6 = pnand %p2519_p0, %p2507_p3  ;;  %p2527_p9 = scmp.lt.s32.totalorder %s2525_s14, %s2518_s29 }
  0x5e   : > { %p2522_p11 = pneg %p2521_p6  ;;  %p2528_p4 = por %p2527_p9, %p2526_p5 }
  0x60   : > { %p2529_p8 = pnand %p2528_p4, %p2522_p11 }
  0x62   : > { %2532 = shalt.err (!%p2529_p8)
}
  0x63   : > { %s3539_s1 = smov 4   ;;  %s3540_s18 = smov 64  }
  0x64   : > { %2111 = dma.hbm_to_vmem [thread:$0]  (!%p2930_p2), %s2926_s21, 1024, %s2928_s26, %s2934_s20, %s3540_s18, %s3540_s18, %s3539_s1  }
  0x65   : > { %p3541_p6 = scmp.ne.s32.totalorder %s3532_s17, 0 }
  0x66   : > { %s2961_s3 = sand.u32 (!%p3541_p6), 1, %s2665_s10   ;;  %p3542_p4 = scmp.ne.s32.totalorder (!%p3541_p6), %s3530_s15, 0 }
  0x67   : > { %352 = sbr.rel (%p3541_p6) target bundleno = 1384 (0x568), region = 56  ;;  %s1803_s5 = sshll.u32 (!%p3541_p6), %s2961_s3, 6 }
  0x68   : > { %s355_s22 = scalar_lea.sflag (!%p3541_p6), [#allocation3], %s2961_s3  ;;  %s2965_s24 = scalar_lea.vmem (!%p3541_p6), [#allocation2], %s1803_s5 }
  0x6c   : > { %2644 = dma.done.wait (%p3542_p4), %s355_s22, 1024  }
  0x6d   : > { %2646 = vsyncadd (%p3542_p4), %s355_s22, 4294966272  ;;  %p3543_p8 = scmp.eq.s32.totalorder %s2827_s13, 0 }
  0x6f   : > { %2648 = dma.done.wait (%p3543_p8), [#allocation6], 5120   ;;  %p3544_p9 = pmov %p3543_p8 }
  0x70   : > { %p3545_p2 = pmov %p3543_p8 }
  0x71   : > { %2650 = vsyncadd (%p3544_p9), [#allocation6], 4294962176 }
  0x72   : > { %2652 = dma.done.wait (%p3545_p2), [#allocation9], 5120   ;;  %p3546_p3 = pmov %p3545_p2 }
  0x73   : > { %s1808_s17 = sshll.u32 %s2961_s3, 7  ;;  %v2305_v0 = vld [vmem:[#allocation5 + $0x38] sm:$0xff]   ;;  %v2306_v1 = vld [vmem:[#allocation5 + $0x30] sm:$0xff]   ;;  %v2307_v2 = vld [vmem:[#allocation5 + $0x28] sm:$0xff]   ;;  %v644_v16 = vlaneseq  ;;  %s3031_s21 = smov 0  }
  0x74   : > { %2654 = vsyncadd (%p3546_p3), [#allocation9], 4294962176  ;;  %1979 = vmatprep.subr.bf16.mxu0 %v2305_v0  ;;  %2043 = vmatprep.subr.bf16.mxu1 %v2305_v0  ;;  %v2308_v3 = vld [vmem:[#allocation5 + $0x20] sm:$0xff]   ;;  %v2309_v6 = vld [vmem:[#allocation5 + $0x18] sm:$0xff]   ;;  %s2997_s27 = scalar_lea.vmem [#allocation11], %s1808_s17 }
  0x75   : > { %1980 = vmatpush3.bf16.msra.mxu0 %v2305_v0  ;;  %2051 = vmatpush3.bf16.msra.mxu1 %v2305_v0  ;;  %v2313_v4 = vld [vmem:[%s2965_s24] sm:$0xff]   ;;  %v2310_v7 = vld [vmem:[#allocation5 + $0x10] sm:$0xff]   ;;  %v2311_v8 = vld [vmem:[#allocation5 + $0x8] sm:$0xff]   ;;  %v2989_v17 = vand.u32 127, %v644_v16 }
  0x76   : > { %1981 = vmatprep.subr.bf16.mxu0 %v2306_v1  ;;  %2044 = vmatprep.subr.bf16.mxu1 %v2306_v1  ;;  %v2314_v5 = vld [vmem:[%s2965_s24 + $0x20] sm:$0xff]   ;;  %v2315_v10 = vld [vmem:[%s2965_s24 + $0x8] sm:$0xff]   ;;  %v2317_v12 = vld [vmem:[%s2965_s24 + $0x10] sm:$0xff]  }
  0x77   : > { %1995 = vmatprep.mubr.bf16.mxu0 %v2313_v4  ;;  %2003 = vmatprep.mubr.bf16.mxu1 %v2314_v5  ;;  %v2312_v9 = vld [vmem:[#allocation5] sm:$0xff]   ;;  %v2316_v11 = vld [vmem:[%s2965_s24 + $0x28] sm:$0xff]   ;;  %v2318_v13 = vld [vmem:[%s2965_s24 + $0x30] sm:$0xff]   ;;  %vm646_vm0 = vcmp.lt.s32.totalorder %v2989_v17, 64 }
  0x78   : > { %v2319_v14 = vld [vmem:[%s2965_s24 + $0x18] sm:$0xff]   ;;  %v1809_v18 = vld [vmem:[%s3513_s2] ss:$0 sm:$0xff] }
  0x79   : > { %1982 = vmatpush3.bf16.msra.mxu0 %v2306_v1  ;;  %2052 = vmatpush3.bf16.msra.mxu1 %v2306_v1  ;;  %v2320_v15 = vld [vmem:[%s2965_s24 + $0x38] sm:$0xff]  }
  0x7a   : > { %1983 = vmatprep.subr.bf16.mxu0 %v2307_v2  ;;  %2045 = vmatprep.subr.bf16.mxu1 %v2307_v2 }
  0x7d   : > { %1984 = vmatpush3.bf16.msra.mxu0 %v2307_v2  ;;  %2053 = vmatpush3.bf16.msra.mxu1 %v2307_v2 }
  0x7e   : > { %1985 = vmatprep.subr.bf16.mxu0 %v2308_v3  ;;  %2046 = vmatprep.subr.bf16.mxu1 %v2308_v3 }
  0x81   : > { %1986 = vmatpush3.bf16.msra.mxu0 %v2308_v3  ;;  %2054 = vmatpush3.bf16.msra.mxu1 %v2308_v3 }
  0x82   : > { %1987 = vmatprep.subr.bf16.mxu0 %v2309_v6  ;;  %2047 = vmatprep.subr.bf16.mxu1 %v2309_v6 }
  0x85   : > { %1988 = vmatpush3.bf16.msra.mxu0 %v2309_v6  ;;  %2055 = vmatpush3.bf16.msra.mxu1 %v2309_v6 }
  0x86   : > { %1989 = vmatprep.subr.bf16.mxu0 %v2310_v7  ;;  %2048 = vmatprep.subr.bf16.mxu1 %v2310_v7 }
  0x89   : > { %1990 = vmatpush3.bf16.msra.mxu0 %v2310_v7  ;;  %2056 = vmatpush3.bf16.msra.mxu1 %v2310_v7 }
  0x8a   : > { %1991 = vmatprep.subr.bf16.mxu0 %v2311_v8  ;;  %2049 = vmatprep.subr.bf16.mxu1 %v2311_v8 }
  0x8d   : > { %1992 = vmatpush3.bf16.msra.mxu0 %v2311_v8  ;;  %2057 = vmatpush3.bf16.msra.mxu1 %v2311_v8 }
  0x8e   : > { %1993 = vmatprep.subr.bf16.mxu0 %v2312_v9  ;;  %2050 = vmatprep.subr.bf16.mxu1 %v2312_v9 }
  0x91   : > { %1994 = vmatpush3.bf16.msra.mxu0 %v2312_v9  ;;  %2058 = vmatpush3.bf16.msra.mxu1 %v2312_v9 }
  0x94   : > { %1996 = vmatmul.mubr.bf16.vlgmr.msra.gmra.mxu0 %v2315_v10  ;;  %2004 = vmatmul.mubr.bf16.vlgmr.msra.gmra.mxu1 %v2316_v11 }
  0x95   : > { %1999 = vmatprep.mubr.bf16.mxu0 %v2317_v12  ;;  %2007 = vmatprep.mubr.bf16.mxu1 %v2318_v13 }
  0x9c   : > { %2000 = vmatmul.mubr.bf16.gmra.mxu0 %v2319_v14  ;;  %2008 = vmatmul.mubr.bf16.gmra.mxu1 %v2320_v15 }
 0x154   : > { %v1997_v19 = vpop.f32.mrf.mxu0  ;;  %v2005_v20 = vpop.f32.mrf.mxu1 }
 0x155   : > { %v590_v21 = vadd.f32 %v1997_v19, %v1809_v18   ;;  %v622_v22 = vadd.f32 %v2005_v20, %v1809_v18  }
 0x156   : > { %v581_v23 = vpop.f32.mrf.mxu0  ;;  %v613_v24 = vpop.f32.mrf.mxu1 }
 0x157   : > { %v582_v25 = vadd.f32 %v1809_v18, %v581_v23   ;;  %v614_v26 = vadd.f32 %v1809_v18, %v613_v24  }
 0x158   : > { %v1998_v27 = vpop.f32.mrf.mxu0  ;;  %v2006_v28 = vpop.f32.mrf.mxu1 }
 0x159   : > { %v593_v29 = vadd.f32 %v1998_v27, %v1809_v18   ;;  %v625_v30 = vadd.f32 %v2006_v28, %v1809_v18  }
 0x15a   : > { %v584_v31 = vpop.f32.mrf.mxu0  ;;  %v616_v32 = vpop.f32.mrf.mxu1 }
 0x15b   : > { %v585_v33 = vadd.f32 %v1809_v18, %v584_v31   ;;  %v617_v34 = vadd.f32 %v1809_v18, %v616_v32  }
 0x15c   : > { %v2001_v35 = vpop.f32.mrf.mxu0  ;;  %v2009_v36 = vpop.f32.mrf.mxu1 }
 0x15d   : > { %v606_v37 = vadd.f32 %v2001_v35, %v1809_v18   ;;  %v638_v38 = vadd.f32 %v2009_v36, %v1809_v18  }
 0x15e   : > { %v597_v39 = vpop.f32.mrf.mxu0  ;;  %v629_v40 = vpop.f32.mrf.mxu1 }
 0x15f   : > { %v598_v41 = vadd.f32 %v1809_v18, %v597_v39   ;;  %v630_v42 = vadd.f32 %v1809_v18, %v629_v40  }
 0x160   : > { %v2002_v43 = vpop.f32.mrf.mxu0  ;;  %v2010_v44 = vpop.f32.mrf.mxu1 }
 0x161   : > { %v609_v45 = vadd.f32 %v2002_v43, %v1809_v18   ;;  %v641_v46 = vadd.f32 %v2010_v44, %v1809_v18  }
 0x162   : > { %v600_v47 = vpop.f32.mrf.mxu0  ;;  %v632_v48 = vpop.f32.mrf.mxu1 }
 0x163   : > { %v601_v49 = vadd.f32 %v1809_v18, %v600_v47   ;;  %v633_v50 = vadd.f32 %v1809_v18, %v632_v48  }
 0x164 LB: >> { %669 = vadd.xlane.f32.xlu0 %v2737_v25  ;;  %673 = vadd.xlane.f32.xlu1 %v2729_v21  ;;  %s1879_s20 = sshll.u32 %s2741_s21, 7  ;;  %s888_s14 = sshra.s32 %s2741_s21, 1  ;;  %s2741_s21 = sphi %s3031_s21, %s652_s21   ;;  %v2737_v25 = vphi %v582_v25, %v3579_v25   ;;  %v2733_v33 = vphi %v585_v33, %v3578_v33   ;;  %v2729_v21 = vphi %v590_v21, %v3577_v21   ;;  %v2725_v29 = vphi %v593_v29, %v3576_v29   ;;  %v2721_v41 = vphi %v598_v41, %v3575_v41   ;;  %v2717_v49 = vphi %v601_v49, %v3574_v49   ;;  %v2713_v37 = vphi %v606_v37, %v3573_v37   ;;  %v2709_v45 = vphi %v609_v45, %v3572_v45   ;;  %v2705_v26 = vphi %v614_v26, %v3571_v26   ;;  %v2701_v34 = vphi %v617_v34, %v3570_v34   ;;  %v2697_v22 = vphi %v622_v22, %v3569_v22   ;;  %v2693_v30 = vphi %v625_v30, %v3568_v30   ;;  %v2689_v42 = vphi %v630_v42, %v3567_v42   ;;  %v2685_v50 = vphi %v633_v50, %v3566_v50   ;;  %v2681_v38 = vphi %v638_v38, %v3565_v38   ;;  %v2677_v46 = vphi %v641_v46, %v3564_v46  }
 0x165   : >> { %s3101_s23 = scalar_lea.vmem [#allocation7], %s1879_s20  ;;  %s3107_s29 = scalar_lea.vmem [#allocation8], %s1879_s20 }
 0x166   : >> { %v2321_v51 = vld [vmem:[%s3101_s23 + $0x74] ss:$8 sps:$4 sm:$0xff]   ;;  %v2323_v52 = vld [vmem:[%s3101_s23 + $0x70] ss:$8 sps:$4 sm:$0xff]   ;;  %v2324_v53 = vld [vmem:[%s3101_s23 + $0x64] ss:$8 sps:$4 sm:$0xff]   ;;  %s1183_s20 = scalar_lea.vmem %s3517_s6, %s2741_s21 }
 0x167   : >> { %988 = vmatprep.subr.bf16.mxu0 %v2321_v51  ;;  %v2326_v54 = vld [vmem:[%s3101_s23 + $0x60] ss:$8 sps:$4 sm:$0xff]   ;;  %s891_s1 = sand.u32 1, %s2741_s21  ;;  %s1880_s18 = sshll.u32 %s888_s14, 2 }
 0x168   : >> { %671 = vadd.xlane.f32.xlu0 %v2733_v33  ;;  %675 = vadd.xlane.f32.xlu1 %v2725_v29  ;;  %s894_s5 = sadd.s32 %s1880_s18, %s891_s1  ;;  %s652_s21 = sadd.s32 1, %s2741_s21  }
 0x169   : >> { %989 = vmatpush1.bf16.msra.mxu0 %v2323_v52  ;;  %v2327_v52 = vld [vmem:[%s3101_s23 + $0x54] ss:$8 sps:$4 sm:$0xff]   ;;  %s895_s17 = scalar_lea.vmem %s3515_s4, %s894_s5  ;;  %p3370_p10 = scmp.ge.s32.totalorder %s652_s21, 2  }
 0x16a   : >> { %990 = vmatprep.subr.bf16.mxu0 %v2324_v53  ;;  %v2397_v17 = vld [vmem:[#allocation10 + $0x18] sm:$0xff] (%p3370_p10)   ;;  %s1882_s14 = sshll.u32 (%p3370_p10), %s2827_s13, 11  ;;  %s1620_s1 = sshll.u32 (%p3370_p10), %s2997_s27, 4  ;;  %s3464_s1 = int_to_ptr.vmem [resolvable:$true] %s1620_s1 }
 0x16b   : > { %s3462_s22 = scalar_lea.hbm (%p3370_p10), %s3520_s9, %s1882_s14  ;;  %s1607_s13 = scalar_lea.sflag (%p3370_p10), [#allocation4], %s2961_s3 }
 0x16c   : >> { %677 = vadd.xlane.f32.xlu0 %v2721_v41  ;;  %679 = vadd.xlane.f32.xlu1 %v2717_v49  ;;  %s2533_s24 = scalar_lea.vmem (%p3370_p10), %s3464_s1, 2048  ;;  %p3580_p7 = scmp.ne.s32.totalorder (%p3370_p10), %s3537_s25, 0 }
 0x16d   : >> { %991 = vmatpush1.bf16.msra.mxu0 %v2326_v54  ;;  %p2534_p12 = scmp.ne.s32.totalorder (%p3370_p10), %s3464_s1, %s2533_s24 }
 0x16e   : >> { %992 = vmatprep.subr.bf16.mxu0 %v2327_v52  ;;  %v2336_v52 = vld [vmem:[%s3101_s23 + $0x24] ss:$8 sps:$4 sm:$0xff]  }
 0x16f   : > { %p2535_p1 = pnand (%p3370_p10), %p2534_p12, %p3580_p7 }
 0x170   : >> { %681 = vadd.xlane.f32.xlu0 %v2713_v37  ;;  %683 = vadd.xlane.f32.xlu1 %v2709_v45 }
 0x171   : > { %p2536_p13 = pneg (%p3370_p10), %p2535_p1 }
 0x174   : >> { %685 = vadd.xlane.f32.xlu0 %v2705_v26  ;;  %687 = vadd.xlane.f32.xlu1 %v2701_v34 }
 0x178   : >> { %689 = vadd.xlane.f32.xlu0 %v2697_v22  ;;  %691 = vadd.xlane.f32.xlu1 %v2693_v30 }
 0x17c   : >> { %693 = vadd.xlane.f32.xlu0 %v2689_v42  ;;  %695 = vadd.xlane.f32.xlu1 %v2685_v50 }
 0x180   : >> { %697 = vadd.xlane.f32.xlu0 %v2681_v38  ;;  %699 = vadd.xlane.f32.xlu1 %v2677_v46 }
 0x1ed   : >> { %v670_v55 = vpop.xlane.xlu0 %669  ;;  %v674_v56 = vpop.xlane.xlu1 %673 }
 0x1ee   : >> { %v701_v57 = vmul.f32 0.015625, %v670_v55  ;;  %v703_v58 = vmul.f32 0.015625, %v674_v56  ;;  %v2329_v55 = vld [vmem:[%s3101_s23 + $0x50] ss:$8 sps:$4 sm:$0xff]  }
 0x1ef   : >> { %993 = vmatpush1.bf16.msra.mxu0 %v2329_v55 }
 0x1f0   : >> { %v3110_v59 = vsub.f32 %v2737_v25, %v701_v57  ;;  %v3113_v60 = vsub.f32 %v2729_v21, %v703_v58 }
 0x1f1   : >> { %v672_v61 = vpop.xlane.xlu0 %671  ;;  %v676_v62 = vpop.xlane.xlu1 %675 }
 0x1f2   : >> { %v702_v63 = vmul.f32 0.015625, %v672_v61  ;;  %v704_v0 = vmul.f32 0.015625, %v676_v62  ;;  %v733_v1 = vsel %vm646_vm0, %v3110_v59, 0.0  ;;  %v735_v2 = vsel %vm646_vm0, %v3113_v60, 0.0 }
 0x1f3   : >> { %v749_v3 = vmul.f32 %v733_v1, %v733_v1  ;;  %v751_v8 = vmul.f32 %v735_v2, %v735_v2 }
 0x1f4   : >> { %v3122_v4 = vsub.f32 %v2733_v33, %v702_v63  ;;  %v3125_v5 = vsub.f32 %v2725_v29, %v704_v0 }
 0x1f5   : >> { %v678_v6 = vpop.xlane.xlu0 %677  ;;  %765 = vadd.xlane.f32.xlu0 %v749_v3  ;;  %v680_v7 = vpop.xlane.xlu1 %679 }
 0x1f6   : >> { %v705_v9 = vmul.f32 0.015625, %v678_v6  ;;  %v706_v10 = vmul.f32 0.015625, %v680_v7  ;;  %v734_v11 = vsel %vm646_vm0, %v3122_v4, 0.0  ;;  %v736_v12 = vsel %vm646_vm0, %v3125_v5, 0.0  ;;  %v2330_v6 = vld [vmem:[%s3101_s23 + $0x44] ss:$8 sps:$4 sm:$0xff]  }
 0x1f7   : >> { %v750_v13 = vmul.f32 %v734_v11, %v734_v11  ;;  %v752_v20 = vmul.f32 %v736_v12, %v736_v12  ;;  %994 = vmatprep.subr.bf16.mxu0 %v2330_v6  ;;  %v2344_v6 = vld [vmem:[%s3101_s23] ss:$8 sps:$4 sm:$0xff]  }
 0x1f8   : >> { %v3134_v14 = vsub.f32 %v2721_v41, %v705_v9  ;;  %v3137_v15 = vsub.f32 %v2717_v49, %v706_v10  ;;  %v2332_v10 = vld [vmem:[%s3101_s23 + $0x40] ss:$8 sps:$4 sm:$0xff]  }
 0x1f9   : >> { %v682_v18 = vpop.xlane.xlu0 %681  ;;  %769 = vadd.xlane.f32.xlu0 %v751_v8  ;;  %767 = vadd.xlane.f32.xlu1 %v750_v13  ;;  %v684_v19 = vpop.xlane.xlu1 %683 }
 0x1fa   : >> { %v707_v23 = vmul.f32 0.015625, %v682_v18  ;;  %v708_v24 = vmul.f32 0.015625, %v684_v19  ;;  %v737_v27 = vsel %vm646_vm0, %v3134_v14, 0.0  ;;  %v738_v28 = vsel %vm646_vm0, %v3137_v15, 0.0  ;;  %995 = vmatpush1.bf16.msra.mxu0 %v2332_v10  ;;  %v2347_v10 = vld [vmem:[%s3107_s29 + $0x70] sm:$0xff]  }
 0x1fb   : >> { %v753_v31 = vmul.f32 %v737_v27, %v737_v27  ;;  %v754_v40 = vmul.f32 %v738_v28, %v738_v28 }
 0x1fc   : >> { %v3146_v32 = vsub.f32 %v2713_v37, %v707_v23  ;;  %v3149_v35 = vsub.f32 %v2709_v45, %v708_v24  ;;  %v2333_v24 = vld [vmem:[%s3101_s23 + $0x34] ss:$8 sps:$4 sm:$0xff]  }
 0x1fd   : >> { %v686_v36 = vpop.xlane.xlu0 %685  ;;  %773 = vadd.xlane.f32.xlu0 %v753_v31  ;;  %771 = vadd.xlane.f32.xlu1 %v752_v20  ;;  %v688_v39 = vpop.xlane.xlu1 %687 }
 0x1fe   : >> { %v709_v43 = vmul.f32 0.015625, %v686_v36  ;;  %v710_v44 = vmul.f32 0.015625, %v688_v39  ;;  %v739_v47 = vsel %vm646_vm0, %v3146_v32, 0.0  ;;  %v740_v48 = vsel %vm646_vm0, %v3149_v35, 0.0  ;;  %v2335_v36 = vld [vmem:[%s3101_s23 + $0x30] ss:$8 sps:$4 sm:$0xff]   ;;  %996 = vmatprep.subr.bf16.mxu0 %v2333_v24 }
 0x1ff   : >> { %v755_v51 = vmul.f32 %v739_v47, %v739_v47  ;;  %v756_v58 = vmul.f32 %v740_v48, %v740_v48  ;;  %997 = vmatpush1.bf16.msra.mxu0 %v2335_v36  ;;  %v2353_v24 = vld [vmem:[%s3107_s29 + $0x58] sm:$0xff]  }
 0x200   : >> { %v3159_v53 = vsub.f32 %v2705_v26, %v709_v43  ;;  %v3162_v54 = vsub.f32 %v2701_v34, %v710_v44  ;;  %998 = vmatprep.subr.bf16.mxu0 %v2336_v52 }
 0x201   : >> { %v690_v56 = vpop.xlane.xlu0 %689  ;;  %777 = vadd.xlane.f32.xlu0 %v755_v51  ;;  %775 = vadd.xlane.f32.xlu1 %v754_v40  ;;  %v692_v57 = vpop.xlane.xlu1 %691 }
 0x202   : >> { %v711_v61 = vmul.f32 0.015625, %v690_v56  ;;  %v712_v62 = vmul.f32 0.015625, %v692_v57  ;;  %v741_v63 = vsel %vm646_vm0, %v3159_v53, 0.0  ;;  %v742_v0 = vsel %vm646_vm0, %v3162_v54, 0.0  ;;  %v2338_v56 = vld [vmem:[%s3101_s23 + $0x20] ss:$8 sps:$4 sm:$0xff]  }
 0x203   : >> { %v757_v1 = vmul.f32 %v741_v63, %v741_v63  ;;  %v758_v9 = vmul.f32 %v742_v0, %v742_v0  ;;  %999 = vmatpush1.bf16.msra.mxu0 %v2338_v56  ;;  %v2341_v0 = vld [vmem:[%s3101_s23 + $0x10] ss:$8 sps:$4 sm:$0xff]  }
 0x204   : >> { %v3172_v2 = vsub.f32 %v2697_v22, %v711_v61  ;;  %v3175_v3 = vsub.f32 %v2693_v30, %v712_v62  ;;  %v2339_v62 = vld [vmem:[%s3101_s23 + $0x14] ss:$8 sps:$4 sm:$0xff]  }
 0x205   : >> { %v694_v7 = vpop.xlane.xlu0 %693  ;;  %781 = vadd.xlane.f32.xlu0 %v757_v1  ;;  %779 = vadd.xlane.f32.xlu1 %v756_v58  ;;  %v696_v8 = vpop.xlane.xlu1 %695  ;;  %v2342_v1 = vld [vmem:[%s3101_s23 + $0x4] ss:$8 sps:$4 sm:$0xff]  }
 0x206   : >> { %v713_v11 = vmul.f32 0.015625, %v694_v7  ;;  %v714_v12 = vmul.f32 0.015625, %v696_v8  ;;  %v743_v13 = vsel %vm646_vm0, %v3172_v2, 0.0  ;;  %v744_v18 = vsel %vm646_vm0, %v3175_v3, 0.0  ;;  %1000 = vmatprep.subr.bf16.mxu0 %v2339_v62  ;;  %v2345_v8 = vld [vmem:[%s3107_s29 + $0x78] sm:$0xff]  }
 0x207   : >> { %v759_v19 = vmul.f32 %v743_v13, %v743_v13  ;;  %v760_v28 = vmul.f32 %v744_v18, %v744_v18  ;;  %1001 = vmatpush1.bf16.msra.mxu0 %v2341_v0  ;;  %v2752_v7 = vmov 0   ;;  %1899 = vmatprep.subr.bf16.mxu1 %v2345_v8  ;;  %v2350_v13 = vld [vmem:[%s3107_s29 + $0x28] sm:$0xff]   ;;  %v2351_v18 = vld [vmem:[%s3107_s29 + $0x60] sm:$0xff]  }
 0x208   : >> { %v3186_v20 = vsub.f32 %v2689_v42, %v713_v11  ;;  %v3189_v23 = vsub.f32 %v2685_v50, %v714_v12  ;;  %1002 = vmatprep.subr.bf16.mxu0 %v2342_v1  ;;  %1020 = vmatprep.mubr.bf16.mxu0 %v2752_v7  ;;  %v2348_v11 = vld [vmem:[%s3107_s29 + $0x30] sm:$0xff]   ;;  %v2349_v12 = vld [vmem:[%s3107_s29 + $0x68] sm:$0xff]  }
 0x209   : >> { %785 = vadd.xlane.f32.xlu0 %v759_v19  ;;  %v698_v27 = vpop.xlane.xlu0 %697  ;;  %783 = vadd.xlane.f32.xlu1 %v758_v9  ;;  %v700_v31 = vpop.xlane.xlu1 %699  ;;  %v2346_v9 = vld [vmem:[%s3107_s29 + $0x38] sm:$0xff]   ;;  %v2352_v19 = vld [vmem:[%s3107_s29 + $0x20] sm:$0xff]  }
 0x20a   : >> { %v715_v39 = vmul.f32 0.015625, %v698_v27  ;;  %v745_v40 = vsel %vm646_vm0, %v3186_v20, 0.0  ;;  %v716_v43 = vmul.f32 0.015625, %v700_v31  ;;  %v746_v44 = vsel %vm646_vm0, %v3189_v23, 0.0  ;;  %1900 = vmatpush3.bf16.msra.mxu1 %v2346_v9  ;;  %v2354_v27 = vld [vmem:[%s3107_s29 + $0x18] sm:$0xff]  }
 0x20b   : >> { %v761_v47 = vmul.f32 %v745_v40, %v745_v40  ;;  %v762_v55 = vmul.f32 %v746_v44, %v746_v44  ;;  %1003 = vmatpush1.bf16.msra.mxu0 %v2344_v6  ;;  %1901 = vmatprep.subr.bf16.mxu1 %v2347_v10 }
 0x20c   : >> { %v3200_v48 = vsub.f32 %v2681_v38, %v715_v39  ;;  %v3203_v51 = vsub.f32 %v2677_v46, %v716_v43 }
 0x20d   : >> { %789 = vadd.xlane.f32.xlu0 %v761_v47  ;;  %787 = vadd.xlane.f32.xlu1 %v760_v28 }
 0x20e   : >> { %v747_v57 = vsel %vm646_vm0, %v3200_v48, 0.0  ;;  %v748_v58 = vsel %vm646_vm0, %v3203_v51, 0.0  ;;  %1902 = vmatpush3.bf16.msra.mxu1 %v2348_v11 }
 0x20f   : >> { %v763_v61 = vmul.f32 %v747_v57, %v747_v57  ;;  %v764_v63 = vmul.f32 %v748_v58, %v748_v58  ;;  %1903 = vmatprep.subr.bf16.mxu1 %v2349_v12 }
 0x211   : >> { %793 = vadd.xlane.f32.xlu0 %v763_v61  ;;  %791 = vadd.xlane.f32.xlu1 %v762_v55 }
 0x212   : >> { %1904 = vmatpush3.bf16.msra.mxu1 %v2350_v13 }
 0x213   : >> { %1905 = vmatprep.subr.bf16.mxu1 %v2351_v18 }
 0x215   : >> { %795 = vadd.xlane.f32.xlu1 %v764_v63 }
 0x216   : >> { %1906 = vmatpush3.bf16.msra.mxu1 %v2352_v19 }
 0x217   : >> { %1907 = vmatprep.subr.bf16.mxu1 %v2353_v24 }
 0x21a   : >> { %1908 = vmatpush3.bf16.msra.mxu1 %v2354_v27 }
 0x27e   : >> { %v766_v28 = vpop.xlane.xlu0 %765 }
 0x27f   : >> { %v797_v31 = vmul.f32 0.015625, %v766_v28 }
 0x281   : >> { %v813_v36 = vadd.f32 1e-05, %v797_v31 }
 0x282   : >> { %v768_v39 = vpop.xlane.xlu1 %767  ;;  %v770_v40 = vpop.xlane.xlu0 %769 }
 0x283   : >> { %v798_v43 = vmul.f32 0.015625, %v768_v39  ;;  %2361 = vrsqrt.f32 %v813_v36  ;;  %v799_v47 = vmul.f32 0.015625, %v770_v40 }
 0x285   : >> { %v814_v44 = vadd.f32 1e-05, %v798_v43  ;;  %v815_v57 = vadd.f32 1e-05, %v799_v47 }
 0x286   : >> { %v772_v52 = vpop.xlane.xlu1 %771  ;;  %v774_v61 = vpop.xlane.xlu0 %773 }
 0x287   : >> { %v800_v55 = vmul.f32 0.015625, %v772_v52  ;;  %2363 = vrsqrt.f32 %v814_v44  ;;  %v801_v63 = vmul.f32 0.015625, %v774_v61 }
 0x289   : >> { %v816_v56 = vadd.f32 1e-05, %v800_v55  ;;  %v817_v6 = vadd.f32 1e-05, %v801_v63 }
 0x28a   : >> { %v776_v58 = vpop.xlane.xlu1 %775  ;;  %v778_v9 = vpop.xlane.xlu0 %777 }
 0x28b   : >> { %2365 = vrsqrt.f32 %v816_v56  ;;  %v802_v62 = vmul.f32 0.015625, %v776_v58  ;;  %v803_v12 = vmul.f32 0.015625, %v778_v9 }
 0x28c   : >> { %2367 = vrsqrt.f32 %v815_v57 }
 0x28d   : >> { %v818_v0 = vadd.f32 1e-05, %v802_v62  ;;  %v819_v31 = vadd.f32 1e-05, %v803_v12 }
 0x28e   : >> { %v780_v1 = vpop.xlane.xlu1 %779  ;;  %v782_v39 = vpop.xlane.xlu0 %781 }
 0x28f   : >> { %2369 = vrsqrt.f32 %v818_v0  ;;  %v804_v10 = vmul.f32 0.015625, %v780_v1  ;;  %v805_v44 = vmul.f32 0.015625, %v782_v39 }
 0x290   : >> { %v2362_v8 = vpop.eup %2361  ;;  %2371 = vrsqrt.f32 %v817_v6 }
 0x291   : >> { %v845_v13 = vmul.f32 %v2362_v8, %v3110_v59  ;;  %v820_v19 = vadd.f32 1e-05, %v804_v10  ;;  %v821_v56 = vadd.f32 1e-05, %v805_v44 }
 0x292   : >> { %v784_v28 = vpop.xlane.xlu1 %783  ;;  %v786_v58 = vpop.xlane.xlu0 %785 }
 0x293   : >> { %2373 = vrsqrt.f32 %v820_v19  ;;  %v806_v40 = vmul.f32 0.015625, %v784_v28 }
 0x294   : >> { %v2364_v11 = vpop.eup %2363  ;;  %2375 = vrsqrt.f32 %v819_v31 }
 0x295   : >> { %v846_v18 = vmul.f32 %v2364_v11, %v3122_v4  ;;  %v822_v47 = vadd.f32 1e-05, %v806_v40 }
 0x296   : >> { %v788_v55 = vpop.xlane.xlu1 %787  ;;  %v790_v10 = vpop.xlane.xlu0 %789 }
 0x297   : >> { %v880_v24 = vpack.c.bf16 %v846_v18, %v845_v13  ;;  %2377 = vrsqrt.f32 %v822_v47  ;;  %v808_v61 = vmul.f32 0.015625, %v788_v55 }
 0x298   : >> { %v2366_v27 = vpop.eup %2365  ;;  %2379 = vrsqrt.f32 %v821_v56 }
 0x299   : >> { %1021 = vmatmul.mubr.bf16.vlgmr.msra.gmra.mxu0 %v880_v24  ;;  %v2368_v36 = vpop.eup %2367  ;;  %v848_v43 = vmul.f32 %v2366_v27, %v3125_v5  ;;  %v807_v5 = vmul.f32 0.015625, %v786_v58  ;;  %v824_v0 = vadd.f32 1e-05, %v808_v61 }
 0x29a   : >> { %1030 = vmatprep.mubr.bf16.mxu0 %v2752_v7  ;;  %v847_v59 = vmul.f32 %v2368_v36, %v3113_v60  ;;  %v792_v6 = vpop.xlane.xlu1 %791  ;;  %v794_v31 = vpop.xlane.xlu0 %793 }
 0x29b   : >> { %v823_v8 = vadd.f32 1e-05, %v807_v5  ;;  %2381 = vrsqrt.f32 %v824_v0  ;;  %v810_v11 = vmul.f32 0.015625, %v792_v6  ;;  %v2358_v0 = vld [vmem:[%s3107_s29 + $0x8] sm:$0xff]  }
 0x29c   : >> { %v881_v4 = vpack.c.bf16 %v848_v43, %v847_v59  ;;  %v2370_v52 = vpop.eup %2369  ;;  %v896_v6 = vld [vmem:[%s895_s17] ss:$2 sm:$0x3]  ;;  %s2753_s17 = smov (%p3370_p10), [#allocation11]  }
 0x29d   : >> { %v2372_v57 = vpop.eup %2371  ;;  %v850_v62 = vmul.f32 %v2370_v52, %v3137_v15  ;;  %2383 = vrsqrt.f32 %v823_v8  ;;  %v809_v15 = vmul.f32 0.015625, %v790_v10  ;;  %v826_v18 = vadd.f32 1e-05, %v810_v11  ;;  %s2537_s15 = sshll.u32 (%p3370_p10), %s2753_s17, 4  ;;  %s2538_s15 = int_to_ptr.vmem [resolvable:$false] %s2537_s15 }
 0x29e   : >> { %v849_v63 = vmul.f32 %v2372_v57, %v3134_v14  ;;  %v796_v24 = vpop.xlane.xlu1 %795  ;;  %s2539_s26 = scalar_lea.vmem (%p3370_p10), %s2538_s15, 4096  ;;  %p2540_p0 = scmp.lt.s32.totalorder (%p3370_p10), %s3464_s1, %s2538_s15 }
 0x29f   : >> { %v825_v27 = vadd.f32 1e-05, %v809_v15  ;;  %2385 = vrsqrt.f32 %v826_v18  ;;  %v812_v36 = vmul.f32 0.015625, %v796_v24  ;;  %p2541_p11 = scmp.lt.s32.totalorder (%p3370_p10), %s2539_s26, %s2533_s24 }
 0x2a0   : >> { %v882_v60 = vpack.c.bf16 %v850_v62, %v849_v63  ;;  %v2374_v1 = vpop.eup %2373  ;;  %v2356_v63 = vld [vmem:[%s3107_s29 + $0x10] sm:$0xff]  }
 0x2a1   : >> { %1031 = vmatmul.mubr.bf16.gmra.mxu0 %v881_v4  ;;  %v2376_v9 = vpop.eup %2375  ;;  %v852_v12 = vmul.f32 %v2374_v1, %v3149_v35  ;;  %2387 = vrsqrt.f32 %v825_v27  ;;  %v811_v35 = vmul.f32 0.015625, %v794_v31  ;;  %v828_v43 = vadd.f32 1e-05, %v812_v36  ;;  %v2360_v1 = vld [vmem:[%s3107_s29] sm:$0xff]   ;;  %p2542_p5 = por (%p3370_p10), %p2541_p11, %p2540_p0 }
 0x2a2   : >> { %1040 = vmatprep.mubr.bf16.mxu0 %v2752_v7  ;;  %v851_v13 = vmul.f32 %v2376_v9, %v3146_v32 }
 0x2a3   : >> { %v827_v59 = vadd.f32 1e-05, %v811_v35  ;;  %2389 = vrsqrt.f32 %v828_v43  ;;  %p2543_p6 = pnand (%p3370_p10), %p2542_p5, %p2536_p13 }
 0x2a4   : >> { %v883_v14 = vpack.c.bf16 %v852_v12, %v851_v13  ;;  %v2378_v19 = vpop.eup %2377 }
 0x2a5   : >> { %v2380_v28 = vpop.eup %2379  ;;  %v854_v39 = vmul.f32 %v2378_v19, %v3162_v54  ;;  %2391 = vrsqrt.f32 %v827_v59 }
 0x2a6   : >> { %v853_v40 = vmul.f32 %v2380_v28, %v3159_v53 }
 0x2a8   : >> { %v884_v32 = vpack.c.bf16 %v854_v39, %v853_v40  ;;  %v2382_v44 = vpop.eup %2381 }
 0x2a9   : >> { %1041 = vmatmul.mubr.bf16.gmra.mxu0 %v882_v60  ;;  %v856_v4 = vmul.f32 %v2382_v44, %v3175_v3  ;;  %v2359_v60 = vld [vmem:[%s3107_s29 + $0x40] sm:$0xff]  }
 0x2aa   : >> { %1050 = vmatprep.mubr.bf16.mxu0 %v2752_v7  ;;  %v2384_v47 = vpop.eup %2383 }
 0x2ab   : >> { %v855_v52 = vmul.f32 %v2384_v47, %v3172_v2 }
 0x2ac   : >> { %v2386_v54 = vpop.eup %2385 }
 0x2ad   : >> { %v885_v55 = vpack.c.bf16 %v856_v4, %v855_v52  ;;  %v858_v56 = vmul.f32 %v2386_v54, %v3189_v23  ;;  %v2355_v23 = vld [vmem:[%s3107_s29 + $0x50] sm:$0xff]  }
 0x2ae   : >> { %v2388_v53 = vpop.eup %2387  ;;  %1909 = vmatprep.subr.bf16.mxu1 %v2355_v23 }
 0x2af   : >> { %v857_v57 = vmul.f32 %v2388_v53, %v3186_v20  ;;  %1910 = vmatpush3.bf16.msra.mxu1 %v2356_v63  ;;  %v2357_v20 = vld [vmem:[%s3107_s29 + $0x48] sm:$0xff]  }
 0x2b0   : >> { %v2390_v61 = vpop.eup %2389  ;;  %1911 = vmatprep.subr.bf16.mxu1 %v2357_v20 }
 0x2b1   : >> { %1051 = vmatmul.mubr.bf16.gmra.mxu0 %v883_v14  ;;  %v886_v58 = vpack.c.bf16 %v858_v56, %v857_v57  ;;  %v860_v3 = vmul.f32 %v2390_v61, %v3203_v51 }
 0x2b2   : >> { %1060 = vmatprep.mubr.bf16.mxu0 %v2752_v7  ;;  %v2392_v2 = vpop.eup %2391 }
 0x2b3   : >> { %v859_v62 = vmul.f32 %v2392_v2, %v3200_v48  ;;  %1912 = vmatpush3.bf16.msra.mxu1 %v2358_v0  ;;  %v899_v48 = vshrl.u32 %v644_v16, 7  ;;  %v2396_v16 = vld [vmem:[#allocation10 + $0x20] sm:$0xff] (%p3370_p10)  }
 0x2b4   : >> { %1913 = vmatprep.subr.bf16.mxu1 %v2359_v60 }
 0x2b5   : >> { %v887_v5 = vpack.c.bf16 %v860_v3, %v859_v62  ;;  %v904_v51 = vsub.s32 1, %v899_v48 }
 0x2b7   : >> { %1914 = vmatpush3.bf16.msra.mxu1 %v2360_v1  ;;  %v3263_v9 = vrot.slane %v896_v6, %v904_v51 }
 0x2b9   : >> { %1061 = vmatmul.mubr.bf16.gmra.mxu0 %v884_v32 }
 0x2ba   : >> { %1070 = vmatprep.mubr.bf16.mxu0 %v2752_v7 }
 0x2c1   : >> { %1071 = vmatmul.mubr.bf16.gmra.mxu0 %v885_v55 }
 0x2c2   : >> { %1080 = vmatprep.mubr.bf16.mxu0 %v2752_v7 }
 0x2c9   : >> { %1081 = vmatmul.mubr.bf16.gmra.mxu0 %v886_v58 }
 0x2ca   : >> { %1090 = vmatprep.mubr.bf16.mxu0 %v2752_v7  ;;  %v900_v7 = vsub.s32 0, %v899_v48 }
 0x2cc   : >> { %v3265_v10 = vrot.slane %v896_v6, %v900_v7 }
 0x2d1   : >> { %1091 = vmatmul.mubr.bf16.gmra.mxu0 %v887_v5 }
 0x359   : >> { %v1022_v8 = vpop.f32.mrf.mxu0 }
 0x35a   : >> { %v1023_v18 = vadd.f32 %v1022_v8, %v3265_v10 }
 0x35b   : >> { %v1024_v11 = vpop.f32.mrf.mxu0 }
 0x35c   : >> { %v1025_v15 = vadd.f32 %v1024_v11, %v3263_v9  ;;  %v1101_v36 = vmax.f32 %v1023_v18, 0.0 }
 0x35d   : >> { %v1026_v12 = vpop.f32.mrf.mxu0 }
 0x35e   : >> { %v1027_v13 = vadd.f32 %v1026_v12, %v3265_v10  ;;  %v1102_v28 = vmax.f32 %v1025_v15, 0.0 }
 0x35f   : >> { %v1028_v14 = vpop.f32.mrf.mxu0 }
 0x360   : >> { %v1029_v19 = vadd.f32 %v1028_v14, %v3263_v9  ;;  %v1103_v24 = vmax.f32 %v1027_v13, 0.0 }
 0x361   : >> { %v1032_v27 = vpop.f32.mrf.mxu0 }
 0x362   : >> { %v1104_v31 = vmax.f32 %v1029_v19, 0.0  ;;  %v1167_v40 = vpack.c.bf16 %v1103_v24, %v1101_v36  ;;  %v1033_v59 = vadd.f32 %v1032_v27, %v3265_v10 }
 0x363   : >> { %v1034_v39 = vpop.f32.mrf.mxu0 }
 0x364   : >> { %v1168_v35 = vpack.c.bf16 %v1104_v31, %v1102_v28  ;;  %v1035_v32 = vadd.f32 %v1034_v39, %v3263_v9  ;;  %v1105_v56 = vmax.f32 %v1033_v59, 0.0 }
 0x365   : >> { %v1036_v43 = vpop.f32.mrf.mxu0 }
 0x366   : >> { %v1037_v44 = vadd.f32 %v1036_v43, %v3265_v10  ;;  %1317 = vmatprep.mubr.bf16.mxu1 %v1168_v35  ;;  %v1106_v54 = vmax.f32 %v1035_v32, 0.0 }
 0x367   : >> { %v1038_v47 = vpop.f32.mrf.mxu0  ;;  %1318 = vmatmul.mubr.bf16.vlgmr.msra.gmra.mxu1 %v1167_v40 }
 0x368   : >> { %v1039_v4 = vadd.f32 %v1038_v47, %v3263_v9  ;;  %v1107_v52 = vmax.f32 %v1037_v44, 0.0 }
 0x369   : >> { %v1042_v55 = vpop.f32.mrf.mxu0 }
 0x36a   : >> { %v1108_v53 = vmax.f32 %v1039_v4, 0.0  ;;  %v1169_v61 = vpack.c.bf16 %v1107_v52, %v1105_v56  ;;  %v1043_v5 = vadd.f32 %v1042_v55, %v3265_v10 }
 0x36b   : >> { %v1044_v57 = vpop.f32.mrf.mxu0 }
 0x36c   : >> { %v1170_v58 = vpack.c.bf16 %v1108_v53, %v1106_v54  ;;  %v1045_v3 = vadd.f32 %v1044_v57, %v3263_v9  ;;  %v1109_v48 = vmax.f32 %v1043_v5, 0.0 }
 0x36d   : >> { %v1046_v2 = vpop.f32.mrf.mxu0 }
 0x36e   : >> { %v1047_v62 = vadd.f32 %v1046_v2, %v3265_v10  ;;  %1325 = vmatprep.mubr.bf16.mxu1 %v1170_v58  ;;  %v1110_v60 = vmax.f32 %v1045_v3, 0.0 }
 0x36f   : >> { %v1048_v23 = vpop.f32.mrf.mxu0  ;;  %1326 = vmatmul.mubr.bf16.gmra.mxu1 %v1169_v61 }
 0x370   : >> { %v1049_v63 = vadd.f32 %v1048_v23, %v3263_v9  ;;  %v1111_v20 = vmax.f32 %v1047_v62, 0.0 }
 0x371   : >> { %v1052_v0 = vpop.f32.mrf.mxu0 }
 0x372   : >> { %v1112_v1 = vmax.f32 %v1049_v63, 0.0  ;;  %v1171_v6 = vpack.c.bf16 %v1111_v20, %v1109_v48  ;;  %v1053_v15 = vadd.f32 %v1052_v0, %v3265_v10 }
 0x373   : >> { %v1054_v51 = vpop.f32.mrf.mxu0 }
 0x374   : >> { %v1172_v7 = vpack.c.bf16 %v1112_v1, %v1110_v60  ;;  %v1055_v11 = vadd.f32 %v1054_v51, %v3263_v9  ;;  %v1113_v28 = vmax.f32 %v1053_v15, 0.0 }
 0x375   : >> { %v1056_v8 = vpop.f32.mrf.mxu0 }
 0x376   : >> { %v1057_v12 = vadd.f32 %v1056_v8, %v3265_v10  ;;  %1333 = vmatprep.mubr.bf16.mxu1 %v1172_v7  ;;  %v1114_v24 = vmax.f32 %v1055_v11, 0.0 }
 0x377   : >> { %v1058_v13 = vpop.f32.mrf.mxu0  ;;  %1334 = vmatmul.mubr.bf16.gmra.mxu1 %v1171_v6 }
 0x378   : >> { %v1059_v18 = vadd.f32 %v1058_v13, %v3263_v9  ;;  %v1115_v14 = vmax.f32 %v1057_v12, 0.0 }
 0x379   : >> { %v1062_v19 = vpop.f32.mrf.mxu0 }
 0x37a   : >> { %v1116_v27 = vmax.f32 %v1059_v18, 0.0  ;;  %v1173_v39 = vpack.c.bf16 %v1115_v14, %v1113_v28  ;;  %v1063_v32 = vadd.f32 %v1062_v19, %v3265_v10 }
 0x37b   : >> { %v1064_v31 = vpop.f32.mrf.mxu0 }
 0x37c   : >> { %v1174_v36 = vpack.c.bf16 %v1116_v27, %v1114_v24  ;;  %v1065_v40 = vadd.f32 %v1064_v31, %v3263_v9  ;;  %v1117_v54 = vmax.f32 %v1063_v32, 0.0 }
 0x37d   : >> { %v1066_v35 = vpop.f32.mrf.mxu0 }
 0x37e   : >> { %v1067_v43 = vadd.f32 %v1066_v35, %v3265_v10  ;;  %1341 = vmatprep.mubr.bf16.mxu1 %v1174_v36  ;;  %v1118_v52 = vmax.f32 %v1065_v40, 0.0 }
 0x37f   : >> { %v1068_v44 = vpop.f32.mrf.mxu0  ;;  %1342 = vmatmul.mubr.bf16.gmra.mxu1 %v1173_v39 }
 0x380   : >> { %v1069_v59 = vadd.f32 %v1068_v44, %v3263_v9  ;;  %v1119_v47 = vmax.f32 %v1067_v43, 0.0 }
 0x381   : >> { %v1072_v4 = vpop.f32.mrf.mxu0 }
 0x382   : >> { %v1120_v55 = vmax.f32 %v1069_v59, 0.0  ;;  %v1175_v57 = vpack.c.bf16 %v1119_v47, %v1117_v54  ;;  %v1073_v3 = vadd.f32 %v1072_v4, %v3265_v10 }
 0x383   : >> { %v1074_v53 = vpop.f32.mrf.mxu0 }
 0x384   : >> { %v1176_v56 = vpack.c.bf16 %v1120_v55, %v1118_v52  ;;  %v1075_v61 = vadd.f32 %v1074_v53, %v3263_v9  ;;  %v1121_v60 = vmax.f32 %v1073_v3, 0.0  ;;  %v3303_v53 = vld [vmem:[%s1183_s20] ss:$0 sm:$0xff] }
 0x385   : >> { %v1076_v58 = vpop.f32.mrf.mxu0 }
 0x386   : >> { %v1077_v2 = vadd.f32 %v1076_v58, %v3265_v10  ;;  %1349 = vmatprep.mubr.bf16.mxu1 %v1176_v56  ;;  %v1122_v20 = vmax.f32 %v1075_v61, 0.0 }
 0x387   : >> { %v1078_v62 = vpop.f32.mrf.mxu0  ;;  %1350 = vmatmul.mubr.bf16.gmra.mxu1 %v1175_v57 }
 0x388   : >> { %v1079_v5 = vadd.f32 %v1078_v62, %v3263_v9  ;;  %v1123_v23 = vmax.f32 %v1077_v2, 0.0 }
 0x389   : >> { %v1082_v63 = vpop.f32.mrf.mxu0 }
 0x38a   : >> { %v1124_v0 = vmax.f32 %v1079_v5, 0.0  ;;  %v1177_v51 = vpack.c.bf16 %v1123_v23, %v1121_v60  ;;  %v1083_v11 = vadd.f32 %v1082_v63, %v3265_v10 }
 0x38b   : >> { %v1084_v1 = vpop.f32.mrf.mxu0 }
 0x38c   : >> { %v1178_v48 = vpack.c.bf16 %v1124_v0, %v1122_v20  ;;  %v1085_v6 = vadd.f32 %v1084_v1, %v3263_v9  ;;  %v1125_v24 = vmax.f32 %v1083_v11, 0.0 }
 0x38d   : >> { %v1086_v7 = vpop.f32.mrf.mxu0 }
 0x38e   : >> { %v1087_v8 = vadd.f32 %v1086_v7, %v3265_v10  ;;  %1357 = vmatprep.mubr.bf16.mxu1 %v1178_v48  ;;  %v1126_v14 = vmax.f32 %v1085_v6, 0.0 }
 0x38f   : >> { %v1088_v12 = vpop.f32.mrf.mxu0  ;;  %1358 = vmatmul.mubr.bf16.gmra.mxu1 %v1177_v51 }
 0x390   : >> { %v1089_v15 = vadd.f32 %v1088_v12, %v3263_v9  ;;  %v1127_v13 = vmax.f32 %v1087_v8, 0.0 }
 0x391   : >> { %v1092_v18 = vpop.f32.mrf.mxu0 }
 0x392   : >> { %v1128_v19 = vmax.f32 %v1089_v15, 0.0  ;;  %v1179_v31 = vpack.c.bf16 %v1127_v13, %v1125_v24  ;;  %v1093_v40 = vadd.f32 %v1092_v18, %v3265_v10 }
 0x393   : >> { %v1094_v27 = vpop.f32.mrf.mxu0 }
 0x394   : >> { %v1180_v28 = vpack.c.bf16 %v1128_v19, %v1126_v14  ;;  %v1095_v39 = vadd.f32 %v1094_v27, %v3263_v9  ;;  %v1129_v4 = vmax.f32 %v1093_v40, 0.0 }
 0x395   : >> { %v1096_v36 = vpop.f32.mrf.mxu0 }
 0x396   : >> { %v1097_v35 = vadd.f32 %v1096_v36, %v3265_v10  ;;  %1365 = vmatprep.mubr.bf16.mxu1 %v1180_v28  ;;  %v1130_v59 = vmax.f32 %v1095_v39, 0.0 }
 0x397   : >> { %v1098_v43 = vpop.f32.mrf.mxu0  ;;  %1366 = vmatmul.mubr.bf16.gmra.mxu1 %v1179_v31 }
 0x398   : >> { %v1099_v32 = vadd.f32 %v1098_v43, %v3263_v9  ;;  %v1131_v44 = vmax.f32 %v1097_v35, 0.0 }
 0x39a   : >> { %v1132_v47 = vmax.f32 %v1099_v32, 0.0  ;;  %v1181_v55 = vpack.c.bf16 %v1131_v44, %v1129_v4 }
 0x39c   : >> { %v1182_v52 = vpack.c.bf16 %v1132_v47, %v1130_v59 }
 0x39e   : >> { %1373 = vmatprep.mubr.bf16.mxu1 %v1182_v52 }
 0x39f   : >> { %1374 = vmatmul.mubr.bf16.gmra.mxu1 %v1181_v55 }
 0x427   : >> { %v1915_v54 = vpop.f32.mrf.mxu1 }
 0x429   : >> { %v1916_v10 = vpop.f32.mrf.mxu1 }
 0x42a   : >> { %v1917_v56 = vadd.f32 %v1916_v10, %v1915_v54 }
 0x42b   : >> { %v1918_v57 = vpop.f32.mrf.mxu1 }
 0x42c   : >> { %v1320_v9 = vadd.f32 %v1917_v56, %v3303_v53 }
 0x42d   : >> { %v1919_v58 = vpop.f32.mrf.mxu1 }
 0x42e   : >> { %v3307_v25 = vadd.f32 %v2737_v25, %v1320_v9   ;;  %v1920_v2 = vadd.f32 %v1919_v58, %v1918_v57 }
 0x42f   : >> { %v1921_v3 = vpop.f32.mrf.mxu1 }
 0x430   : >> { %v3547_v61 = vmov %v3307_v25  ;;  %v1323_v62 = vadd.f32 %v1920_v2, %v3303_v53 }
 0x431   : >> { %v1922_v5 = vpop.f32.mrf.mxu1 }
 0x432   : >> { %v3311_v33 = vadd.f32 %v2733_v33, %v1323_v62   ;;  %v1923_v63 = vadd.f32 %v1922_v5, %v1921_v3 }
 0x433   : >> { %v1924_v20 = vpop.f32.mrf.mxu1 }
 0x434   : >> { %v3548_v23 = vmov %v3311_v33  ;;  %v1328_v0 = vadd.f32 %v1923_v63, %v3303_v53 }
 0x435   : >> { %v1925_v60 = vpop.f32.mrf.mxu1 }
 0x436   : >> { %v3315_v21 = vadd.f32 %v2729_v21, %v1328_v0   ;;  %v1926_v48 = vadd.f32 %v1925_v60, %v1924_v20 }
 0x437   : >> { %v1927_v51 = vpop.f32.mrf.mxu1 }
 0x438   : >> { %v3549_v1 = vmov %v3315_v21  ;;  %v1331_v25 = vadd.f32 %v1926_v48, %v3303_v53 }
 0x439   : >> { %v1928_v7 = vpop.f32.mrf.mxu1 }
 0x43a   : >> { %v3319_v29 = vadd.f32 %v2725_v29, %v1331_v25   ;;  %v1929_v8 = vadd.f32 %v1928_v7, %v1927_v51 }
 0x43b   : >> { %v1930_v11 = vpop.f32.mrf.mxu1 }
 0x43c   : >> { %v3550_v6 = vmov %v3319_v29  ;;  %v1336_v33 = vadd.f32 %v1929_v8, %v3303_v53 }
 0x43d   : >> { %v1931_v12 = vpop.f32.mrf.mxu1 }
 0x43e   : >> { %v3323_v41 = vadd.f32 %v2721_v41, %v1336_v33   ;;  %v1932_v13 = vadd.f32 %v1931_v12, %v1930_v11 }
 0x43f   : >> { %v1933_v18 = vpop.f32.mrf.mxu1 }
 0x440   : >> { %v3551_v15 = vmov %v3323_v41  ;;  %v1339_v21 = vadd.f32 %v1932_v13, %v3303_v53 }
 0x441   : >> { %v1934_v14 = vpop.f32.mrf.mxu1 }
 0x442   : >> { %v3327_v49 = vadd.f32 %v2717_v49, %v1339_v21   ;;  %v1935_v24 = vadd.f32 %v1934_v14, %v1933_v18  ;;  %v3577_v21 = vmov %v3549_v1  ;;  %v1398_v18 = vmax.f32 (%p3370_p10), %v3547_v61, 0.0  ;;  %v2394_v14 = vld [vmem:[#allocation10 + $0x30] sm:$0xff] (%p3370_p10)  }
 0x443   : >> { %v1936_v27 = vpop.f32.mrf.mxu1 }
 0x444   : >> { %v3552_v19 = vmov %v3327_v49  ;;  %v1344_v29 = vadd.f32 %v1935_v24, %v3303_v53  ;;  %v1399_v24 = vmax.f32 (%p3370_p10), %v3548_v23, 0.0 }
 0x445   : >> { %v1937_v28 = vpop.f32.mrf.mxu1 }
 0x446   : >> { %v3331_v37 = vadd.f32 %v2713_v37, %v1344_v29   ;;  %v1938_v36 = vadd.f32 %v1937_v28, %v1936_v27  ;;  %v3576_v29 = vmov %v3550_v6  ;;  %v1430_v28 = vpack.c.bf16 (%p3370_p10), %v1399_v24, %v1398_v18 }
 0x447   : >> { %v1939_v39 = vpop.f32.mrf.mxu1  ;;  %v1402_v29 = vmax.f32 (%p3370_p10), %v3551_v15, 0.0 }
 0x448   : >> { %v3553_v31 = vmov %v3331_v37  ;;  %v1347_v41 = vadd.f32 %v1938_v36, %v3303_v53  ;;  %2027 = vmatprep.mubr.bf16.mxu0 (%p3370_p10), %v1430_v28 }
 0x449   : >> { %v1940_v35 = vpop.f32.mrf.mxu1 }
 0x44a   : >> { %v3335_v45 = vadd.f32 %v2709_v45, %v1347_v41   ;;  %v1941_v43 = vadd.f32 %v1940_v35, %v1939_v39  ;;  %v3575_v41 = vmov %v3551_v15  ;;  %v2395_v39 = vld [vmem:[#allocation10 + $0x28] sm:$0xff] (%p3370_p10)  }
 0x44b   : >> { %v1942_v32 = vpop.f32.mrf.mxu1  ;;  %v1403_v41 = vmax.f32 (%p3370_p10), %v3552_v19, 0.0 }
 0x44c   : >> { %v3554_v40 = vmov %v3335_v45  ;;  %v1352_v49 = vadd.f32 %v1941_v43, %v3303_v53 }
 0x44d   : >> { %v1943_v44 = vpop.f32.mrf.mxu1  ;;  %v1405_v15 = vmax.f32 (%p3370_p10), %v3554_v40, 0.0 }
 0x44e   : >> { %v3339_v26 = vadd.f32 %v2705_v26, %v1352_v49   ;;  %v1944_v47 = vadd.f32 %v1943_v44, %v1942_v32  ;;  %v3574_v49 = vmov %v3552_v19 }
 0x44f   : >> { %v1945_v4 = vpop.f32.mrf.mxu1 }
 0x450   : >> { %v3555_v59 = vmov %v3339_v26  ;;  %v1355_v37 = vadd.f32 %v1944_v47, %v3303_v53 }
 0x451   : >> { %v1946_v52 = vpop.f32.mrf.mxu1  ;;  %v1406_v27 = vmax.f32 (%p3370_p10), %v3555_v59, 0.0 }
 0x452   : >> { %v3343_v34 = vadd.f32 %v2701_v34, %v1355_v37   ;;  %v1947_v54 = vadd.f32 %v1946_v52, %v1945_v4  ;;  %v3573_v37 = vmov %v3553_v31 }
 0x453   : >> { %v1948_v10 = vpop.f32.mrf.mxu1 }
 0x454   : >> { %v3556_v55 = vmov %v3343_v34  ;;  %v1360_v45 = vadd.f32 %v1947_v54, %v3303_v53 }
 0x455   : >> { %v1949_v56 = vpop.f32.mrf.mxu1  ;;  %v1407_v36 = vmax.f32 (%p3370_p10), %v3556_v55, 0.0 }
 0x456   : >> { %v3347_v22 = vadd.f32 %v2697_v22, %v1360_v45   ;;  %v1950_v9 = vadd.f32 %v1949_v56, %v1948_v10  ;;  %v3572_v45 = vmov %v3554_v40 }
 0x457   : >> { %v1951_v58 = vpop.f32.mrf.mxu1  ;;  %v1434_v35 = vpack.c.bf16 (%p3370_p10), %v1407_v36, %v1406_v27 }
 0x458   : >> { %v3557_v57 = vmov %v3347_v22  ;;  %v1363_v26 = vadd.f32 %v1950_v9, %v3303_v53 }
 0x459   : >> { %v1952_v2 = vpop.f32.mrf.mxu1  ;;  %2035 = vmatprep.mubr.bf16.mxu1 (%p3370_p10), %v1434_v35 }
 0x45a   : >> { %v3351_v30 = vadd.f32 %v2693_v30, %v1363_v26   ;;  %v1953_v62 = vadd.f32 %v1952_v2, %v1951_v58  ;;  %v3571_v26 = vmov %v3555_v59  ;;  %v1404_v59 = vmax.f32 (%p3370_p10), %v3553_v31, 0.0  ;;  %v1864_v31 = vld [vmem:[%s3519_s8] ss:$0 sm:$0xff] (%p3370_p10) }
 0x45b   : >> { %v1954_v5 = vpop.f32.mrf.mxu1 }
 0x45c   : >> { %v3558_v3 = vmov %v3351_v30  ;;  %v1368_v34 = vadd.f32 %v1953_v62, %v3303_v53  ;;  %v1433_v4 = vpack.c.bf16 (%p3370_p10), %v1405_v15, %v1404_v59 }
 0x45d   : >> { %v1955_v63 = vpop.f32.mrf.mxu1  ;;  %v1409_v21 = vmax.f32 (%p3370_p10), %v3558_v3, 0.0 }
 0x45e   : >> { %v3355_v42 = vadd.f32 %v2689_v42, %v1368_v34   ;;  %v1956_v0 = vadd.f32 %v1955_v63, %v1954_v5  ;;  %v3570_v34 = vmov %v3556_v55 }
 0x45f   : >> { %v1957_v60 = vpop.f32.mrf.mxu1 }
 0x460   : >> { %v3559_v20 = vmov %v3355_v42  ;;  %v1371_v22 = vadd.f32 %v1956_v0, %v3303_v53 }
 0x461   : >> { %v1958_v48 = vpop.f32.mrf.mxu1  ;;  %v3567_v42 = vmov %v3559_v20  ;;  %v1410_v43 = vmax.f32 (%p3370_p10), %v3559_v20, 0.0 }
 0x462   : >> { %v3359_v50 = vadd.f32 %v2685_v50, %v1371_v22   ;;  %v1959_v25 = vadd.f32 %v1958_v48, %v1957_v60  ;;  %v3569_v22 = vmov %v3557_v57  ;;  %v2399_v42 = vld [vmem:[#allocation10 + $0x8] sm:$0xff] (%p3370_p10)  }
 0x463   : >> { %v1960_v7 = vpop.f32.mrf.mxu1 }
 0x464   : >> { %v3560_v51 = vmov %v3359_v50  ;;  %v1376_v30 = vadd.f32 %v1959_v25, %v3303_v53  ;;  %v3579_v25 = vmov %v3547_v61  ;;  %v1401_v61 = vmax.f32 (%p3370_p10), %v3550_v6, 0.0 }
 0x465   : >> { %v1961_v8 = vpop.f32.mrf.mxu1  ;;  %v3566_v50 = vmov %v3560_v51  ;;  %v1411_v32 = vmax.f32 (%p3370_p10), %v3560_v51, 0.0  ;;  %v1432_v6 = vpack.c.bf16 (%p3370_p10), %v1403_v41, %v1402_v29 }
 0x466   : >> { %v3363_v38 = vadd.f32 %v2681_v38, %v1376_v30   ;;  %v1962_v33 = vadd.f32 %v1961_v8, %v1960_v7  ;;  %v3568_v30 = vmov %v3558_v3  ;;  %v1400_v50 = vmax.f32 (%p3370_p10), %v3549_v1, 0.0 }
 0x467   : > { %v1436_v44 = vpack.c.bf16 (%p3370_p10), %v1411_v32, %v1410_v43 }
 0x468   : >> { %v3561_v11 = vmov %v3363_v38  ;;  %v1379_v12 = vadd.f32 %v1962_v33, %v3303_v53  ;;  %v3578_v33 = vmov %v3548_v23  ;;  %v2393_v53 = vld [vmem:[#allocation10 + $0x38] sm:$0xff] (%p3370_p10)   ;;  %v1408_v23 = vmax.f32 (%p3370_p10), %v3557_v57, 0.0 }
 0x469   : >> { %v3565_v38 = vmov %v3561_v11  ;;  %651 = sbr.rel (!%p3370_p10) target bundleno = 356 (0x164), region = 128  ;;  %2011 = vmatprep.subr.bf16.mxu0 (%p3370_p10), %v2393_v53  ;;  %2059 = vmatprep.subr.bf16.mxu1 (%p3370_p10), %v2393_v53  ;;  %v1431_v49 = vpack.c.bf16 (%p3370_p10), %v1401_v61, %v1400_v50  ;;  %v1412_v19 = vmax.f32 (%p3370_p10), %v3561_v11, 0.0 }
 0x46a   : >> { %v3367_v46 = vadd.f32 %v2677_v46, %v1379_v12   ;;  %2012 = vmatpush3.bf16.msra.mxu0 (%p3370_p10), %v2393_v53  ;;  %2067 = vmatpush3.bf16.msra.mxu1 (%p3370_p10), %v2393_v53  ;;  %v2398_v38 = vld [vmem:[#allocation10 + $0x10] sm:$0xff] (%p3370_p10)   ;;  %v1435_v1 = vpack.c.bf16 (%p3370_p10), %v1409_v21, %v1408_v23 }
 0x46b   : > { %2013 = vmatprep.subr.bf16.mxu0 (%p3370_p10), %v2394_v14  ;;  %2060 = vmatprep.subr.bf16.mxu1 (%p3370_p10), %v2394_v14 }
 0x46c   : >> { %v3562_v13 = vmov %v3367_v46 }
 0x46d   : >> { %v3564_v46 = vmov %v3562_v13  ;;  %v1413_v47 = vmax.f32 (%p3370_p10), %v3562_v13, 0.0 }
 0x46e   : > { %2014 = vmatpush3.bf16.msra.mxu0 %v2394_v14  ;;  %2068 = vmatpush3.bf16.msra.mxu1 %v2394_v14  ;;  %v2400_v46 = vld [vmem:[#allocation10] sm:$0xff]  }
 0x46f   : > { %2015 = vmatprep.subr.bf16.mxu0 %v2395_v39  ;;  %2061 = vmatprep.subr.bf16.mxu1 %v2395_v39  ;;  %v1437_v37 = vpack.c.bf16 %v1413_v47, %v1412_v19 }
 0x472   : > { %2016 = vmatpush3.bf16.msra.mxu0 %v2395_v39  ;;  %2069 = vmatpush3.bf16.msra.mxu1 %v2395_v39 }
 0x473   : > { %2017 = vmatprep.subr.bf16.mxu0 %v2396_v16  ;;  %2062 = vmatprep.subr.bf16.mxu1 %v2396_v16 }
 0x476   : > { %2018 = vmatpush3.bf16.msra.mxu0 %v2396_v16  ;;  %2070 = vmatpush3.bf16.msra.mxu1 %v2396_v16 }
 0x477   : > { %2019 = vmatprep.subr.bf16.mxu0 %v2397_v17  ;;  %2063 = vmatprep.subr.bf16.mxu1 %v2397_v17 }
 0x47a   : > { %2020 = vmatpush3.bf16.msra.mxu0 %v2397_v17  ;;  %2071 = vmatpush3.bf16.msra.mxu1 %v2397_v17 }
 0x47b   : > { %2021 = vmatprep.subr.bf16.mxu0 %v2398_v38  ;;  %2064 = vmatprep.subr.bf16.mxu1 %v2398_v38 }
 0x47e   : > { %2022 = vmatpush3.bf16.msra.mxu0 %v2398_v38  ;;  %2072 = vmatpush3.bf16.msra.mxu1 %v2398_v38 }
 0x47f   : > { %2023 = vmatprep.subr.bf16.mxu0 %v2399_v42  ;;  %2065 = vmatprep.subr.bf16.mxu1 %v2399_v42 }
 0x482   : > { %2024 = vmatpush3.bf16.msra.mxu0 %v2399_v42  ;;  %2073 = vmatpush3.bf16.msra.mxu1 %v2399_v42 }
 0x483   : > { %2025 = vmatprep.subr.bf16.mxu0 %v2400_v46  ;;  %2066 = vmatprep.subr.bf16.mxu1 %v2400_v46 }
 0x486   : > { %2026 = vmatpush3.bf16.msra.mxu0 %v2400_v46  ;;  %2074 = vmatpush3.bf16.msra.mxu1 %v2400_v46 }
 0x489   : > { %2028 = vmatmul.mubr.bf16.vlgmr.msra.gmra.mxu0 %v1431_v49  ;;  %2036 = vmatmul.mubr.bf16.vlgmr.msra.gmra.mxu1 %v1435_v1 }
 0x48a   : > { %2031 = vmatprep.mubr.bf16.mxu0 %v1432_v6  ;;  %2039 = vmatprep.mubr.bf16.mxu1 %v1436_v44 }
 0x491   : > { %2032 = vmatmul.mubr.bf16.gmra.mxu0 %v1433_v4  ;;  %2040 = vmatmul.mubr.bf16.gmra.mxu1 %v1437_v37 }
 0x549   : > { %v2029_v52 = vpop.f32.mrf.mxu0  ;;  %v2037_v40 = vpop.f32.mrf.mxu1 }
 0x54a   : > { %v1536_v55 = vadd.f32 %v2029_v52, %v1864_v31  ;;  %v1568_v54 = vadd.f32 %v2037_v40, %v1864_v31 }
 0x54b   : > { %v1527_v10 = vpop.f32.mrf.mxu0  ;;  %v1559_v45 = vpop.f32.mrf.mxu1 }
 0x54c   : > { %1592 = vst [vmem:[%s2997_s27 + $0x10] sm:$0xff] %v1536_v55  ;;  %1600 = vst [vmem:[%s2997_s27 + $0x50] sm:$0xff] %v1568_v54  ;;  %v1528_v56 = vadd.f32 %v1864_v31, %v1527_v10  ;;  %v1560_v57 = vadd.f32 %v1864_v31, %v1559_v45 }
 0x54d   : > { %v2030_v9 = vpop.f32.mrf.mxu0  ;;  %v2038_v58 = vpop.f32.mrf.mxu1 }
 0x54e   : > { %1590 = vst [vmem:[%s2997_s27] sm:$0xff] %v1528_v56  ;;  %1598 = vst [vmem:[%s2997_s27 + $0x40] sm:$0xff] %v1560_v57  ;;  %v1539_v26 = vadd.f32 %v2030_v9, %v1864_v31  ;;  %v1571_v2 = vadd.f32 %v2038_v58, %v1864_v31 }
 0x54f   : > { %v1530_v3 = vpop.f32.mrf.mxu0  ;;  %v1562_v62 = vpop.f32.mrf.mxu1 }
 0x550   : > { %1593 = vst [vmem:[%s2997_s27 + $0x18] sm:$0xff] %v1539_v26  ;;  %1601 = vst [vmem:[%s2997_s27 + $0x58] sm:$0xff] %v1571_v2  ;;  %v1531_v5 = vadd.f32 %v1864_v31, %v1530_v3  ;;  %v1563_v34 = vadd.f32 %v1864_v31, %v1562_v62 }
 0x551   : > { %v2033_v63 = vpop.f32.mrf.mxu0  ;;  %v2041_v20 = vpop.f32.mrf.mxu1 }
 0x552   : > { %1591 = vst [vmem:[%s2997_s27 + $0x8] sm:$0xff] %v1531_v5  ;;  %1599 = vst [vmem:[%s2997_s27 + $0x48] sm:$0xff] %v1563_v34  ;;  %v1552_v0 = vadd.f32 %v2033_v63, %v1864_v31  ;;  %v1584_v60 = vadd.f32 %v2041_v20, %v1864_v31 }
 0x553   : > { %v1543_v22 = vpop.f32.mrf.mxu0  ;;  %v1575_v48 = vpop.f32.mrf.mxu1 }
 0x554   : > { %1596 = vst [vmem:[%s2997_s27 + $0x30] sm:$0xff] %v1552_v0  ;;  %1604 = vst [vmem:[%s2997_s27 + $0x70] sm:$0xff] %v1584_v60  ;;  %v1544_v51 = vadd.f32 %v1864_v31, %v1543_v22  ;;  %v1576_v25 = vadd.f32 %v1864_v31, %v1575_v48 }
 0x555   : > { %v2034_v7 = vpop.f32.mrf.mxu0  ;;  %v2042_v30 = vpop.f32.mrf.mxu1 }
 0x556   : > { %1594 = vst [vmem:[%s2997_s27 + $0x20] sm:$0xff] %v1544_v51  ;;  %1602 = vst [vmem:[%s2997_s27 + $0x60] sm:$0xff] %v1576_v25  ;;  %v1555_v8 = vadd.f32 %v2034_v7, %v1864_v31  ;;  %v1587_v11 = vadd.f32 %v2042_v30, %v1864_v31 }
 0x557   : > { %v1546_v33 = vpop.f32.mrf.mxu0  ;;  %v1578_v12 = vpop.f32.mrf.mxu1 }
 0x558   : > { %1597 = vst [vmem:[%s2997_s27 + $0x38] sm:$0xff] %v1555_v8  ;;  %1605 = vst [vmem:[%s2997_s27 + $0x78] sm:$0xff] %v1587_v11  ;;  %v1547_v13 = vadd.f32 %v1864_v31, %v1546_v33  ;;  %v1579_v53 = vadd.f32 %v1864_v31, %v1578_v12 }
 0x55a   : > { %1595 = vst [vmem:[%s2997_s27 + $0x28] sm:$0xff] %v1547_v13  ;;  %1603 = vst [vmem:[%s2997_s27 + $0x68] sm:$0xff] %v1579_v53 }
 0x55b   : > { %2546 = shalt.err (!%p2543_p6)
}
 0x55c   : > { %s2547_s27 = scalar_lea.hbm %s3462_s22, 2048  ;;  %s2551_s21 = scalar_lea.hbm %s3520_s9, 4096 }
 0x55d   : > { %p2548_p4 = scmp.ne.s32.totalorder %s3462_s22, %s2547_s27  ;;  %p2552_p2 = scmp.lt.s32.totalorder %s3462_s22, %s3520_s9 }
 0x55e   : > { %p2553_p3 = scmp.lt.s32.totalorder %s2551_s21, %s2547_s27 }
 0x55f   : > { %p2549_p8 = pnand %p2548_p4, %p3580_p7 }
 0x560   : > { %p2554_p10 = por %p2553_p3, %p2552_p2 }
 0x561   : > { %p2550_p9 = pneg %p2549_p8 }
 0x563   : > { %p2555_p12 = pnand %p2554_p10, %p2550_p9 }
 0x565   : > { %2558 = shalt.err (!%p2555_p12)
}
 0x566   : > { %s2754_s18 = smov 128   ;;  %s2755_s5 = smov 8  }
 0x567   : > { %2093 = dma.vmem_to_hbm [thread:$0]  (%p3580_p7), %s3464_s1, 2048, %s3462_s22, %s1607_s13, %s2754_s18, %s2754_s18, %s2755_s5  }
 0x568 PF: > { %s1635_s24 = sand.u32 1, %s2661_s30   ;;  %p3581_p1 = scmp.ne.s32.totalorder %s3531_s16, 0 }
 0x569   : > { %p3582_p13 = scmp.ge.s32.totalorder %s2673_s12, 2  ;;  %s1636_s17 = scalar_lea.sflag [#allocation4], %s1635_s24 }
 0x56b   : > { %p2113_p0 = pnand %p3582_p13, %p3581_p1 }
 0x56d   : > { %p2114_p11 = pneg %p2113_p0 }
 0x56f   : > { %2656 = dma.done.wait (%p2114_p11), %s1636_s17, 2048  }
 0x570   : > { %2658 = vsyncadd (%p2114_p11), %s1636_s17, 4294965248  ;;  %p24_p5 = scmp.ge.s32.totalorder %s2903_s19, 4   ;;  %s3583_s30 = smov %s2665_s10 }
 0x571   : > { %s3584_s10 = smov %s2669_s11  ;;  %s3585_s11 = smov %s2919_s28 }
 0x572   : > { %s3586_s12 = smov %s2903_s19  ;;  %26 = sbr.rel (!%p24_p5) target bundleno = 11 (0xb), region = 139 }
 0x577   :  { %1641 = vsyncpa [#allocation3], 1 }
 0x578   :  { %1643 = vsyncpa [#allocation3 + $0x1], 1 }
 0x579   :  { %1644 = vsyncpa [#allocation6], 1 }
 0x57a   :  { %1645 = vsyncpa [#allocation9], 1 }
 0x57b   :  { %1646 = vsyncpa [#allocation4], 1 }
 0x57c   :  { %1648 = vsyncpa [#allocation4 + $0x1], 1 }

</bundles_post_ra>
